<compile_context>
chip_gen: v7x
topology: tpu7x:2x2x1
jax: 0.10.0
libtpu: 0.0.40
codegen_flags: <defaults>
</compile_context>

<pallas_src>
import jax
import jax.numpy as jnp
from jax.experimental import pallas as pl
from jax.experimental.pallas import tpu as pltpu

IN_DIM, H1, H2, OUT_DIM = 80, 700, 500, 5          # logical sizes (PyTorch module)
INP, H1P, H2P, OUTP = 128, 768, 512, 128           # lane-padded sizes
_NEG = -1e30                                       # "minus infinity" for pad logits


def _mlp_kernel(x_ref, w1_ref, b1_ref, w2_ref, b2_ref, w3_ref, b3_ref, o_ref):
    # lin1 + sigmoid  (bf16 MXU inputs, f32 accumulation, f32 elementwise).
    # x arrives pre-cast to bf16 and K-padded to 128 lanes.
    a1 = jnp.dot(x_ref[...], w1_ref[...],
                 preferred_element_type=jnp.float32) + b1_ref[...]
    # sigmoid(a) = 0.5 + 0.5*tanh(0.5*a): one EUP push per element (vs exp+recip).
    h1 = 0.5 + 0.5 * jnp.tanh(0.5 * a1)

    # lin2 + sigmoid
    a2 = jnp.dot(h1.astype(jnp.bfloat16), w2_ref[...],
                 preferred_element_type=jnp.float32) + b2_ref[...]
    h2 = 0.5 + 0.5 * jnp.tanh(0.5 * a2)

    # lin3 + softmax (exp / sum(exp), as in the PyTorch forward).
    # Pad lanes of b3 are -1e30 -> exp underflows to exactly 0, so the padded
    # output columns contribute nothing to the denominator.
    a3 = jnp.dot(h2.astype(jnp.bfloat16), w3_ref[...],
                 preferred_element_type=jnp.float32) + b3_ref[...]
    e = jnp.exp(a3)
    denom = jnp.sum(e, axis=-1, keepdims=True)
    o_ref[...] = (e * pl.reciprocal(denom, approx=True)).astype(o_ref.dtype)


def _round_up(n, m):
    return ((n + m - 1) // m) * m


def _choose_bm(B, bm_max):
    """Batch tile: small batches collapse to one aligned step; batches >= 256
    always get >= 2 grid steps (128-aligned) so v7x's two TCs both get work."""
    if B < 256:
        align = 128 if B >= 128 else 8
        return _round_up(max(B, 1), align)
    half = _round_up((B + 1) // 2, 128)
    return min(bm_max, half)


def prepare_params(p):
    """Pad to lane multiples and cast matmul weights to bf16 (biases stay f32).

    Zero-pad rows of w1 (input 80->128) match zero-padded x columns; zero-pad
    columns of w1/w2 make padded hidden lanes sigmoid(0)=0.5, which multiplies
    the zero pad-rows of the next weight -> result unchanged."""
    w1 = jnp.zeros((INP, H1P), jnp.bfloat16).at[:IN_DIM, :H1].set(
        p["w1"].astype(jnp.bfloat16))
    b1 = jnp.zeros((1, H1P), jnp.float32).at[:, :H1].set(p["b1"])
    w2 = jnp.zeros((H1P, H2P), jnp.bfloat16).at[:H1, :H2].set(
        p["w2"].astype(jnp.bfloat16))
    b2 = jnp.zeros((1, H2P), jnp.float32).at[:, :H2].set(p["b2"])
    w3 = jnp.zeros((H2P, OUTP), jnp.bfloat16).at[:H2, :OUT_DIM].set(
        p["w3"].astype(jnp.bfloat16))
    b3 = jnp.full((1, OUTP), _NEG, jnp.float32).at[:, :OUT_DIM].set(p["b3"])
    return (w1, b1, w2, b2, w3, b3)


def first_network_v1_forward(x, padded_params, *, bm_max=1024):
    """x: (B, 80) float32.  padded_params: output of prepare_params()."""
    B = x.shape[0]
    bm = _choose_bm(B, bm_max)
    Bp = _round_up(B, bm)

    # Host-side: pad batch + features (80 -> 128) and pre-cast to bf16 so the
    # kernel's x tile is lane-dense and needs no in-kernel cast.
    xp = jnp.zeros((Bp, INP), jnp.bfloat16).at[:B, :IN_DIM].set(
        x.astype(jnp.bfloat16))

    w1, b1, w2, b2, w3, b3 = padded_params
    full = lambda shape: pl.BlockSpec(shape, lambda i: (0, 0))

    out = pl.pallas_call(
        _mlp_kernel,
        out_shape=jax.ShapeDtypeStruct((Bp, OUTP), jnp.float32),
        grid_spec=pltpu.PrefetchScalarGridSpec(
            num_scalar_prefetch=0,
            grid=(Bp // bm,),
            in_specs=[
                pl.BlockSpec((bm, INP), lambda i: (i, 0)),      # x tile (bf16)
                full((INP, H1P)),                               # w1 (bf16)
                full((1, H1P)),                                 # b1 (f32)
                full((H1P, H2P)),                               # w2 (bf16)
                full((1, H2P)),                                 # b2 (f32)
                full((H2P, OUTP)),                              # w3 (bf16)
                full((1, OUTP)),                                # b3 (f32, pads=-1e30)
            ],
            out_specs=pl.BlockSpec((bm, OUTP), lambda i: (i, 0)),
        ),
        compiler_params=pltpu.CompilerParams(
            dimension_semantics=("parallel",),
            vmem_limit_bytes=32 * 1024 * 1024),
    )(xp, w1, b1, w2, b2, w3, b3)

    return out[:B, :OUT_DIM]


def init_params(key):
    """Deterministic init mirroring nn.Linear default (uniform +/-1/sqrt(fan_in)).
    Weights stored transposed: (in_features, out_features). f32, unpadded."""
    ks = jax.random.split(key, 6)

    def lin(kw, kb, fan_in, fan_out):
        bound = 1.0 / jnp.sqrt(fan_in)
        w = jax.random.uniform(kw, (fan_in, fan_out), jnp.float32, -bound, bound)
        b = jax.random.uniform(kb, (1, fan_out), jnp.float32, -bound, bound)
        return w, b

    w1, b1 = lin(ks[0], ks[1], IN_DIM, H1)
    w2, b2 = lin(ks[2], ks[3], H1, H2)
    w3, b3 = lin(ks[4], ks[5], H2, OUT_DIM)
    return {"w1": w1, "b1": b1, "w2": w2, "b2": b2, "w3": w3, "b3": b3}


def _reference_forward(x, p):
    """f32 reference with the exact PyTorch semantics (no max-subtract softmax)."""
    a1 = x @ p["w1"] + p["b1"]
    h1 = jax.nn.sigmoid(a1)
    a2 = h1 @ p["w2"] + p["b2"]
    h2 = jax.nn.sigmoid(a2)
    a3 = h2 @ p["w3"] + p["b3"]
    e = jnp.exp(a3)
    return e / jnp.sum(e, axis=-1, keepdims=True)


if __name__ == "__main__":
    key = jax.random.PRNGKey(0)
    k_x, k_p = jax.random.split(key)

    params = init_params(k_p)
    padded = prepare_params(params)

    def check(B):
        x = jax.random.normal(k_x, (B, IN_DIM), jnp.float32)
        out = jax.block_until_ready(first_network_v1_forward(x, padded))
        ref = _reference_forward(x, params)
        assert out.shape == (B, OUT_DIM)
        # bf16 matmul inputs + approx softmax reciprocal -> loosened tolerance.
        assert jnp.allclose(out, ref, atol=5e-2), f"mismatch at B={B}"
        assert jnp.allclose(jnp.sum(out, axis=-1), 1.0, atol=5e-3)

    check(8)      # tiny batch: single grid step, bm=8
    check(384)    # mid batch: bm=256, 2 grid steps (batch padded to 512)
    check(1000)   # larger batch: bm=512, 2 grid steps (megacore-friendly)

    print("KERNEL_OK")
</pallas_src>

<mosaic_0001>
module attributes {stable_mosaic.version = 11 : i64} {
  func.func @_mlp_kernel(%arg0: i32, %arg1: memref<8x128xbf16, #tpu.memory_space<vmem>>, %arg2: memref<128x768xbf16, #tpu.memory_space<vmem>>, %arg3: memref<1x768xf32, #tpu.memory_space<vmem>>, %arg4: memref<768x512xbf16, #tpu.memory_space<vmem>>, %arg5: memref<1x512xf32, #tpu.memory_space<vmem>>, %arg6: memref<512x128xbf16, #tpu.memory_space<vmem>>, %arg7: memref<1x128xf32, #tpu.memory_space<vmem>>, %arg8: memref<8x128xf32, #tpu.memory_space<vmem>>) attributes {dimension_semantics = [#tpu.dimension_semantics<parallel>], iteration_bounds = array<i64: 1>, scalar_prefetch = 0 : i64, scratch_operands = 0 : i64, tpu.core_type = #tpu.core_type<tc>, window_params = [{transform_indices = @transform_0, window_bounds = array<i64: 8, 128>}, {pipeline_mode = #tpu.pipeline_mode<synchronous>, transform_indices = @transform_1, window_bounds = array<i64: 128, 768>}, {pipeline_mode = #tpu.pipeline_mode<synchronous>, transform_indices = @transform_2, window_bounds = array<i64: 1, 768>}, {pipeline_mode = #tpu.pipeline_mode<synchronous>, transform_indices = @transform_3, window_bounds = array<i64: 768, 512>}, {pipeline_mode = #tpu.pipeline_mode<synchronous>, transform_indices = @transform_4, window_bounds = array<i64: 1, 512>}, {pipeline_mode = #tpu.pipeline_mode<synchronous>, transform_indices = @transform_5, window_bounds = array<i64: 512, 128>}, {pipeline_mode = #tpu.pipeline_mode<synchronous>, transform_indices = @transform_6, window_bounds = array<i64: 1, 128>}, {transform_indices = @transform_7, window_bounds = array<i64: 8, 128>}]} {
    %c0 = arith.constant 0 : index
    %c0_0 = arith.constant 0 : index
    %0 = vector.load %arg1[%c0, %c0_0] : memref<8x128xbf16, #tpu.memory_space<vmem>>, vector<8x128xbf16>
    %c0_1 = arith.constant 0 : index
    %c0_2 = arith.constant 0 : index
    %1 = vector.load %arg2[%c0_1, %c0_2] : memref<128x768xbf16, #tpu.memory_space<vmem>>, vector<128x768xbf16>
    %cst = arith.constant dense<0.000000e+00> : vector<8x768xf32>
    %2 = tpu.matmul %0, %1, %cst {dimension_numbers = #tpu.dot_dimension_numbers<[1], [0], [0], [1], [0, 0, 1, 1], [], []>} : vector<8x128xbf16>, vector<128x768xbf16>, vector<8x768xf32> -> vector<8x768xf32>
    %c0_3 = arith.constant 0 : index
    %c0_4 = arith.constant 0 : index
    %3 = vector.load %arg3[%c0_3, %c0_4] : memref<1x768xf32, #tpu.memory_space<vmem>>, vector<1x768xf32>
    %4 = vector.broadcast %3 : vector<1x768xf32> to vector<8x768xf32>
    %5 = arith.addf %2, %4 : vector<8x768xf32>
    %cst_5 = arith.constant 5.000000e-01 : f32
    %6 = vector.broadcast %cst_5 : f32 to vector<8x768xf32>
    %7 = arith.mulf %6, %5 : vector<8x768xf32>
    %8 = math.tanh %7 : vector<8x768xf32>
    %cst_6 = arith.constant 5.000000e-01 : f32
    %9 = vector.broadcast %cst_6 : f32 to vector<8x768xf32>
    %10 = arith.mulf %9, %8 : vector<8x768xf32>
    %cst_7 = arith.constant 5.000000e-01 : f32
    %11 = vector.broadcast %cst_7 : f32 to vector<8x768xf32>
    %12 = arith.addf %11, %10 : vector<8x768xf32>
    %13 = arith.truncf %12 : vector<8x768xf32> to vector<8x768xbf16>
    %c0_8 = arith.constant 0 : index
    %c0_9 = arith.constant 0 : index
    %14 = vector.load %arg4[%c0_8, %c0_9] : memref<768x512xbf16, #tpu.memory_space<vmem>>, vector<768x512xbf16>
    %cst_10 = arith.constant dense<0.000000e+00> : vector<8x512xf32>
    %15 = tpu.matmul %13, %14, %cst_10 {dimension_numbers = #tpu.dot_dimension_numbers<[1], [0], [0], [1], [0, 0, 1, 1], [], []>} : vector<8x768xbf16>, vector<768x512xbf16>, vector<8x512xf32> -> vector<8x512xf32>
    %c0_11 = arith.constant 0 : index
    %c0_12 = arith.constant 0 : index
    %16 = vector.load %arg5[%c0_11, %c0_12] : memref<1x512xf32, #tpu.memory_space<vmem>>, vector<1x512xf32>
    %17 = vector.broadcast %16 : vector<1x512xf32> to vector<8x512xf32>
    %18 = arith.addf %15, %17 : vector<8x512xf32>
    %cst_13 = arith.constant 5.000000e-01 : f32
    %19 = vector.broadcast %cst_13 : f32 to vector<8x512xf32>
    %20 = arith.mulf %19, %18 : vector<8x512xf32>
    %21 = math.tanh %20 : vector<8x512xf32>
    %cst_14 = arith.constant 5.000000e-01 : f32
    %22 = vector.broadcast %cst_14 : f32 to vector<8x512xf32>
    %23 = arith.mulf %22, %21 : vector<8x512xf32>
    %cst_15 = arith.constant 5.000000e-01 : f32
    %24 = vector.broadcast %cst_15 : f32 to vector<8x512xf32>
    %25 = arith.addf %24, %23 : vector<8x512xf32>
    %26 = arith.truncf %25 : vector<8x512xf32> to vector<8x512xbf16>
    %c0_16 = arith.constant 0 : index
    %c0_17 = arith.constant 0 : index
    %27 = vector.load %arg6[%c0_16, %c0_17] : memref<512x128xbf16, #tpu.memory_space<vmem>>, vector<512x128xbf16>
    %cst_18 = arith.constant dense<0.000000e+00> : vector<8x128xf32>
    %28 = tpu.matmul %26, %27, %cst_18 {dimension_numbers = #tpu.dot_dimension_numbers<[1], [0], [0], [1], [0, 0, 1, 1], [], []>} : vector<8x512xbf16>, vector<512x128xbf16>, vector<8x128xf32> -> vector<8x128xf32>
    %c0_19 = arith.constant 0 : index
    %c0_20 = arith.constant 0 : index
    %29 = vector.load %arg7[%c0_19, %c0_20] : memref<1x128xf32, #tpu.memory_space<vmem>>, vector<1x128xf32>
    %30 = vector.broadcast %29 : vector<1x128xf32> to vector<8x128xf32>
    %31 = arith.addf %28, %30 : vector<8x128xf32>
    %32 = math.exp %31 : vector<8x128xf32>
    %cst_21 = arith.constant dense<0.000000e+00> : vector<8xf32>
    %33 = vector.multi_reduction <add>, %32, %cst_21 [1] : vector<8x128xf32> to vector<8xf32>
    %34 = vector.shape_cast %33 : vector<8xf32> to vector<8x1xf32>
    %35 = tpu.reciprocal %34 {approx = true} : vector<8x1xf32> -> vector<8x1xf32>
    %36 = vector.broadcast %35 : vector<8x1xf32> to vector<8x128xf32>
    %37 = arith.mulf %32, %36 : vector<8x128xf32>
    %c0_22 = arith.constant 0 : index
    %c0_23 = arith.constant 0 : index
    %38 = vector.load %arg8[%c0_22, %c0_23] : memref<8x128xf32, #tpu.memory_space<vmem>>, vector<8x128xf32>
    tpu.vector_store %arg8[%c0_22, %c0_23], %37 {strides = array<i32>} : memref<8x128xf32, #tpu.memory_space<vmem>>, vector<8x128xf32>,
    return
  }
  func.func @transform_0(%arg0: i32) -> (i32, i32) {
    %c0_i32 = arith.constant 0 : i32
    %c0_i32_0 = arith.constant 0 : i32
    return %arg0, %c0_i32 : i32, i32
  }
  func.func @transform_1(%arg0: i32) -> (i32, i32) {
    %c0_i32 = arith.constant 0 : i32
    %c0_i32_0 = arith.constant 0 : i32
    %c0_i32_1 = arith.constant 0 : i32
    return %c0_i32, %c0_i32_0 : i32, i32
  }
  func.func @transform_2(%arg0: i32) -> (i32, i32) {
    %c0_i32 = arith.constant 0 : i32
    %c0_i32_0 = arith.constant 0 : i32
    %c0_i32_1 = arith.constant 0 : i32
    return %c0_i32, %c0_i32_0 : i32, i32
  }
  func.func @transform_3(%arg0: i32) -> (i32, i32) {
    %c0_i32 = arith.constant 0 : i32
    %c0_i32_0 = arith.constant 0 : i32
    %c0_i32_1 = arith.constant 0 : i32
    return %c0_i32, %c0_i32_0 : i32, i32
  }
  func.func @transform_4(%arg0: i32) -> (i32, i32) {
    %c0_i32 = arith.constant 0 : i32
    %c0_i32_0 = arith.constant 0 : i32
    %c0_i32_1 = arith.constant 0 : i32
    return %c0_i32, %c0_i32_0 : i32, i32
  }
  func.func @transform_5(%arg0: i32) -> (i32, i32) {
    %c0_i32 = arith.constant 0 : i32
    %c0_i32_0 = arith.constant 0 : i32
    %c0_i32_1 = arith.constant 0 : i32
    return %c0_i32, %c0_i32_0 : i32, i32
  }
  func.func @transform_6(%arg0: i32) -> (i32, i32) {
    %c0_i32 = arith.constant 0 : i32
    %c0_i32_0 = arith.constant 0 : i32
    %c0_i32_1 = arith.constant 0 : i32
    return %c0_i32, %c0_i32_0 : i32, i32
  }
  func.func @transform_7(%arg0: i32) -> (i32, i32) {
    %c0_i32 = arith.constant 0 : i32
    %c0_i32_0 = arith.constant 0 : i32
    return %arg0, %c0_i32 : i32, i32
  }
}

</mosaic_0001>

<bundles_post_ra>
// kernel: tpu_custom_call.1
= control target key start
LH: loop header
LB: loop body
LE: loop exit
PB: predicated region body
PF: predicated region fallthrough
CT: control target
= control target key end

     0   :  { %12 = vsyncpa [#allocation3], 0  ;;  %s3412_s0 = inlined_call_operand.hbm [shape: bf16[8,128], index: 0, kind: input, shape index: {}]   ;;  %s3413_s1 = inlined_call_operand.hbm [shape: bf16[128,768], index: 1, kind: input, shape index: {}]   ;;  %s3414_s2 = inlined_call_operand.vmem [shape: f32[1,768], index: 2, kind: input, shape index: {}]   ;;  %s3415_s3 = inlined_call_operand.hbm [shape: bf16[768,512], index: 3, kind: input, shape index: {}]   ;;  %s3416_s4 = inlined_call_operand.vmem [shape: f32[1,512], index: 4, kind: input, shape index: {}]   ;;  %s3417_s5 = inlined_call_operand.hbm [shape: bf16[512,128], index: 5, kind: input, shape index: {}]   ;;  %s3418_s6 = inlined_call_operand.vmem [shape: f32[1,128], index: 6, kind: input, shape index: {}]   ;;  %s3419_s7 = inlined_call_operand.hbm [shape: f32[8,128], index: 7, kind: output, shape index: {}]  }
   0x1   :  { %13 = vsyncpa [#allocation6], 0 }
   0x2   :  { %14 = vsyncpa [#allocation9], 0 }
   0x3   :  { %15 = vsyncpa [#allocation4], 0  ;;  %s3245_s24 = smov [#allocation5]   ;;  %s3127_s28 = scalar_lea.hbm %s3413_s1, 6144 }
   0x4   :  { %s31_s25 = sshll.u32 %s3245_s24, 4  ;;  %p3128_p0 = scmp.ne.s32.totalorder %s3413_s1, %s3127_s28  ;;  %s32_s25 = int_to_ptr.vmem [resolvable:$true] %s31_s25 }
   0x5   :  { %p3131_p1 = scmp.lt.u32.totalorder %s3127_s28, %s3413_s1 }
   0x7   :  { %p3133_p2 = pnand %p3131_p1, %p3128_p0 }
   0x9   :  { %3136 = shalt.err (!%p3133_p2)
}
   0xa   :  { %s3137_s10 = scalar_lea.vmem %s32_s25, 6144  ;;  %p3142_p4 = scmp.lt.s32.totalorder %s32_s25, %s32_s25 }
   0xb   :  { %p3138_p3 = scmp.ne.s32.totalorder %s32_s25, %s3137_s10  ;;  %p3143_p5 = scmp.lt.s32.totalorder %s3137_s10, %s3137_s10 }
   0xd   :  { %p3144_p6 = por %p3143_p5, %p3142_p4 }
   0xf   :  { %p3145_p7 = pnand %p3144_p6, %p3138_p3 }
  0x11   :  { %3148 = shalt.err (!%p3145_p7)
}
  0x12   :  { %s3246_s11 = smov 384   ;;  %s3247_s12 = smov 24  }
  0x13   :  { %37 = dma.hbm_to_vmem [thread:$0]  %s3413_s1, 6144, %s32_s25, [#allocation6], %s3246_s11, %s3246_s11, %s3247_s12  }
  0x14   :  { %s3248_s15 = smov [#allocation2]   ;;  %s3249_s17 = smov [#allocation7]  }
  0x15   :  { %s22_s16 = sshll.u32 %s3248_s15, 4  ;;  %s45_s18 = sshll.u32 %s3249_s17, 4  ;;  %s23_s16 = int_to_ptr.vmem [resolvable:$true] %s22_s16  ;;  %s46_s18 = int_to_ptr.vmem [resolvable:$true] %s45_s18 }
  0x16   :  { %s3149_s21 = scalar_lea.hbm %s3412_s0, 64 }
  0x17   :  { %p3150_p8 = scmp.ne.s32.totalorder %s3412_s0, %s3149_s21  ;;  %p3153_p9 = scmp.lt.u32.totalorder %s3149_s21, %s3412_s0 }
  0x19   :  { %p3155_p10 = pnand %p3153_p9, %p3150_p8 }
  0x1b   :  { %3158 = shalt.err (!%p3155_p10)
}
  0x1c   :  { %s3159_s1 = scalar_lea.vmem %s23_s16, 64  ;;  %p3164_p12 = scmp.lt.s32.totalorder %s23_s16, %s23_s16 }
  0x1d   :  { %p3160_p11 = scmp.ne.s32.totalorder %s23_s16, %s3159_s1  ;;  %p3165_p13 = scmp.lt.s32.totalorder %s3159_s1, %s3159_s1 }
  0x1f   :  { %p3166_p0 = por %p3165_p13, %p3164_p12 }
  0x21   :  { %p3167_p1 = pnand %p3166_p0, %p3160_p11 }
  0x23   :  { %3170 = shalt.err (!%p3167_p1)
}
  0x24   :  { %25 = dma.hbm_to_vmem [thread:$0]  %s3412_s0, 64, %s23_s16, [#allocation3]  }
  0x25   :  { %s3171_s30 = scalar_lea.hbm %s3415_s3, 24576 }
  0x26   :  { %p3172_p2 = scmp.ne.s32.totalorder %s3415_s3, %s3171_s30  ;;  %p3175_p3 = scmp.lt.u32.totalorder %s3171_s30, %s3415_s3 }
  0x28   :  { %p3177_p4 = pnand %p3175_p3, %p3172_p2 }
  0x2a   :  { %3180 = shalt.err (!%p3177_p4)
}
  0x2b   :  { %s3181_s12 = scalar_lea.vmem %s46_s18, 24576  ;;  %p3186_p6 = scmp.lt.s32.totalorder %s46_s18, %s46_s18 }
  0x2c   :  { %p3182_p5 = scmp.ne.s32.totalorder %s46_s18, %s3181_s12  ;;  %p3187_p7 = scmp.lt.s32.totalorder %s3181_s12, %s3181_s12 }
  0x2e   :  { %p3188_p8 = por %p3187_p7, %p3186_p6 }
  0x30   :  { %p3189_p9 = pnand %p3188_p8, %p3182_p5 }
  0x32   :  { %3192 = shalt.err (!%p3189_p9)
}
  0x33   :  { %s3250_s0 = smov 256   ;;  %s3251_s13 = smov 16  }
  0x34   :  { %51 = dma.hbm_to_vmem [thread:$0]  %s3415_s3, 24576, %s46_s18, [#allocation6], %s3250_s0, %s3250_s0, %s3251_s13  }
  0x35   :  { %s3252_s16 = smov [#allocation8]   ;;  %s3193_s21 = scalar_lea.hbm %s3417_s5, 4096 }
  0x36   :  { %s59_s17 = sshll.u32 %s3252_s16, 4  ;;  %p3194_p10 = scmp.ne.s32.totalorder %s3417_s5, %s3193_s21  ;;  %s60_s17 = int_to_ptr.vmem [resolvable:$true] %s59_s17 }
  0x37   :  { %p3197_p11 = scmp.lt.u32.totalorder %s3193_s21, %s3417_s5 }
  0x39   :  { %p3199_p12 = pnand %p3197_p11, %p3194_p10 }
  0x3b   :  { %3202 = shalt.err (!%p3199_p12)
}
  0x3c   :  { %s3203_s1 = scalar_lea.vmem %s60_s17, 4096  ;;  %p3208_p0 = scmp.lt.s32.totalorder %s60_s17, %s60_s17 }
  0x3d   :  { %p3204_p13 = scmp.ne.s32.totalorder %s60_s17, %s3203_s1  ;;  %p3209_p1 = scmp.lt.s32.totalorder %s3203_s1, %s3203_s1 }
  0x3f   :  { %p3210_p2 = por %p3209_p1, %p3208_p0 }
  0x41   :  { %p3211_p3 = pnand %p3210_p2, %p3204_p13 }
  0x43   :  { %3214 = shalt.err (!%p3211_p3)
}
  0x44   :  { %s3253_s3 = smov 64   ;;  %s3254_s18 = smov 4  }
  0x45   :  { %65 = dma.hbm_to_vmem [thread:$0]  %s3417_s5, 4096, %s60_s17, [#allocation9], %s3253_s3, %s3253_s3, %s3254_s18  }
  0x46   :  { %3237 = dma.done.wait [#allocation3], 64  }
  0x47   :  { %3238 = vsyncadd [#allocation3], 4294967232 }
  0x48   :  { %3239 = dma.done.wait [#allocation6], 30720  }
  0x49   :  { %3240 = vsyncadd [#allocation6], 4294936576 }
  0x4a   :  { %3241 = dma.done.wait [#allocation9], 4096  }
  0x4b   :  { %3242 = vsyncadd [#allocation9], 4294963200  ;;  %v3255_v0 = vmov 0   ;;  %v2711_v1 = vld [vmem:[#allocation5 + $0x4] ss:$24 sps:$4 sm:$0xff]   ;;  %s3256_s8 = smov [#allocation10]  }
  0x4c   :  { %434 = vmatprep.mubr.bf16.mxu0 %v3255_v0  ;;  %475 = vmatprep.mubr.bf16.mxu1 %v3255_v0  ;;  %v2713_v2 = vld [vmem:[#allocation5] ss:$24 sps:$4 sm:$0xff]   ;;  %v2714_v3 = vld [vmem:[#allocation5 + $0x34] ss:$24 sps:$4 sm:$0xff]   ;;  %v2716_v4 = vld [vmem:[#allocation5 + $0x30] ss:$24 sps:$4 sm:$0xff]  }
  0x4d   :  { %402 = vmatprep.subr.bf16.mxu0 %v2711_v1  ;;  %v2717_v5 = vld [vmem:[#allocation5 + $0x64] ss:$24 sps:$4 sm:$0xff]   ;;  %v2719_v6 = vld [vmem:[#allocation5 + $0x60] ss:$24 sps:$4 sm:$0xff]   ;;  %v2720_v7 = vld [vmem:[#allocation5 + $0x94] ss:$24 sps:$4 sm:$0xff]  }
  0x4e   :  { %403 = vmatpush1.bf16.msra.mxu0 %v2713_v2  ;;  %v2722_v8 = vld [vmem:[#allocation5 + $0x90] ss:$24 sps:$4 sm:$0xff]   ;;  %v2723_v9 = vld [vmem:[#allocation5 + $0xc4] ss:$24 sps:$4 sm:$0xff]   ;;  %v2725_v13 = vld [vmem:[#allocation5 + $0xc0] ss:$24 sps:$4 sm:$0xff]  }
  0x4f   :  { %404 = vmatprep.subr.bf16.mxu0 %v2714_v3  ;;  %v2735_v10 = vld [vmem:[#allocation5 + $0xc] ss:$24 sps:$4 sm:$0xff]   ;;  %v2737_v11 = vld [vmem:[#allocation5 + $0x8] ss:$24 sps:$4 sm:$0xff]   ;;  %v2738_v12 = vld [vmem:[#allocation5 + $0x3c] ss:$24 sps:$4 sm:$0xff]  }
  0x50   :  { %443 = vmatprep.subr.bf16.mxu1 %v2735_v10  ;;  %v2740_v14 = vld [vmem:[#allocation5 + $0x38] ss:$24 sps:$4 sm:$0xff]   ;;  %v2741_v15 = vld [vmem:[#allocation5 + $0x6c] ss:$24 sps:$4 sm:$0xff]   ;;  %v2743_v18 = vld [vmem:[#allocation5 + $0x68] ss:$24 sps:$4 sm:$0xff]  }
  0x51   :  { %444 = vmatpush1.bf16.msra.mxu1 %v2737_v11  ;;  %v2726_v16 = vld [vmem:[#allocation5 + $0xf4] ss:$24 sps:$4 sm:$0xff]   ;;  %v2728_v17 = vld [vmem:[#allocation5 + $0xf0] ss:$24 sps:$4 sm:$0xff]   ;;  %v2729_v20 = vld [vmem:[#allocation5 + $0x124] ss:$24 sps:$4 sm:$0xff]  }
  0x52   :  { %405 = vmatpush1.bf16.msra.mxu0 %v2716_v4  ;;  %445 = vmatprep.subr.bf16.mxu1 %v2738_v12  ;;  %v2744_v19 = vld [vmem:[#allocation5 + $0x9c] ss:$24 sps:$4 sm:$0xff]   ;;  %v2731_v21 = vld [vmem:[#allocation5 + $0x120] ss:$24 sps:$4 sm:$0xff]   ;;  %v2747_v23 = vld [vmem:[#allocation5 + $0xcc] ss:$24 sps:$4 sm:$0xff]  }
  0x53   :  { %406 = vmatprep.subr.bf16.mxu0 %v2717_v5  ;;  %v2746_v22 = vld [vmem:[#allocation5 + $0x98] ss:$24 sps:$4 sm:$0xff]   ;;  %v2732_v24 = vld [vmem:[#allocation5 + $0x154] ss:$24 sps:$4 sm:$0xff]   ;;  %v2749_v26 = vld [vmem:[#allocation5 + $0xc8] ss:$24 sps:$4 sm:$0xff]  }
  0x54   :  { %v2734_v25 = vld [vmem:[#allocation5 + $0x150] ss:$24 sps:$4 sm:$0xff]   ;;  %v2750_v27 = vld [vmem:[#allocation5 + $0xfc] ss:$24 sps:$4 sm:$0xff]   ;;  %v2753_v31 = vld [vmem:[#allocation5 + $0x12c] ss:$24 sps:$4 sm:$0xff]  }
  0x55   :  { %446 = vmatpush1.bf16.msra.mxu1 %v2740_v14  ;;  %v2761_v28 = vld [vmem:[#allocation5 + $0x14] ss:$24 sps:$4 sm:$0xff]   ;;  %v3347_v29 = vld [vmem:[#allocation2] sm:$0xf]  ;;  %v2752_v30 = vld [vmem:[#allocation5 + $0xf8] ss:$24 sps:$4 sm:$0xff]  }
  0x56   :  { %407 = vmatpush1.bf16.msra.mxu0 %v2719_v6  ;;  %447 = vmatprep.subr.bf16.mxu1 %v2741_v15  ;;  %v2759_v32 = vld [vmem:[#allocation5 + $0x10] ss:$24 sps:$4 sm:$0xff]   ;;  %v2764_v33 = vld [vmem:[#allocation5 + $0x44] ss:$24 sps:$4 sm:$0xff]   ;;  %v2762_v36 = vld [vmem:[#allocation5 + $0x40] ss:$24 sps:$4 sm:$0xff]  }
  0x57   :  { %408 = vmatprep.subr.bf16.mxu0 %v2720_v7  ;;  %v2755_v34 = vld [vmem:[#allocation5 + $0x128] ss:$24 sps:$4 sm:$0xff]   ;;  %v2756_v35 = vld [vmem:[#allocation5 + $0x15c] ss:$24 sps:$4 sm:$0xff]   ;;  %v2758_v38 = vld [vmem:[#allocation5 + $0x158] ss:$24 sps:$4 sm:$0xff]  }
  0x58   :  { %v2767_v37 = vld [vmem:[#allocation5 + $0x74] ss:$24 sps:$4 sm:$0xff]   ;;  %v2765_v39 = vld [vmem:[#allocation5 + $0x70] ss:$24 sps:$4 sm:$0xff]   ;;  %v2770_v41 = vld [vmem:[#allocation5 + $0xa4] ss:$24 sps:$4 sm:$0xff]  }
  0x59   :  { %448 = vmatpush1.bf16.msra.mxu1 %v2743_v18  ;;  %v2785_v40 = vld [vmem:[#allocation7 + $0x4] ss:$16 sps:$4 sm:$0xff]   ;;  %v2768_v42 = vld [vmem:[#allocation5 + $0xa0] ss:$24 sps:$4 sm:$0xff]   ;;  %v2771_v46 = vld [vmem:[#allocation5 + $0xd0] ss:$24 sps:$4 sm:$0xff]  }
  0x5a   :  { %409 = vmatpush1.bf16.msra.mxu0 %v2722_v8  ;;  %449 = vmatprep.subr.bf16.mxu1 %v2744_v19  ;;  %v2783_v43 = vld [vmem:[#allocation7] ss:$16 sps:$4 sm:$0xff]   ;;  %v2791_v44 = vld [vmem:[#allocation7 + $0x24] ss:$16 sps:$4 sm:$0xff]   ;;  %v2788_v61 = vld [vmem:[#allocation7 + $0xc] ss:$16 sps:$4 sm:$0xff]  }
  0x5b   :  { %410 = vmatprep.subr.bf16.mxu0 %v2723_v9  ;;  %v2773_v45 = vld [vmem:[#allocation5 + $0xd4] ss:$24 sps:$4 sm:$0xff]   ;;  %v2789_v47 = vld [vmem:[#allocation7 + $0x20] ss:$16 sps:$4 sm:$0xff]   ;;  %v2776_v49 = vld [vmem:[#allocation5 + $0x104] ss:$24 sps:$4 sm:$0xff]  }
  0x5c   :  { %v2797_v48 = vld [vmem:[#allocation7 + $0x44] ss:$16 sps:$4 sm:$0xff]   ;;  %v2774_v50 = vld [vmem:[#allocation5 + $0x100] ss:$24 sps:$4 sm:$0xff]   ;;  %v2777_v54 = vld [vmem:[#allocation5 + $0x130] ss:$24 sps:$4 sm:$0xff]  }
  0x5d   :  { %450 = vmatpush1.bf16.msra.mxu1 %v2746_v22  ;;  %v2795_v51 = vld [vmem:[#allocation7 + $0x40] ss:$16 sps:$4 sm:$0xff]   ;;  %v2803_v52 = vld [vmem:[#allocation7 + $0x64] ss:$16 sps:$4 sm:$0xff]   ;;  %v2786_v62 = vld [vmem:[#allocation7 + $0x8] ss:$16 sps:$4 sm:$0xff]  }
  0x5e   :  { %411 = vmatpush1.bf16.msra.mxu0 %v2725_v13  ;;  %451 = vmatprep.subr.bf16.mxu1 %v2747_v23  ;;  %v2779_v53 = vld [vmem:[#allocation5 + $0x134] ss:$24 sps:$4 sm:$0xff]   ;;  %v2801_v55 = vld [vmem:[#allocation7 + $0x60] ss:$16 sps:$4 sm:$0xff]   ;;  %v2782_v57 = vld [vmem:[#allocation5 + $0x164] ss:$24 sps:$4 sm:$0xff]  }
  0x5f   :  { %412 = vmatprep.subr.bf16.mxu0 %v2726_v16  ;;  %v2809_v56 = vld [vmem:[#allocation7 + $0x84] ss:$16 sps:$4 sm:$0xff]   ;;  %v2780_v58 = vld [vmem:[#allocation5 + $0x160] ss:$24 sps:$4 sm:$0xff]   ;;  %v2794_v1 = vld [vmem:[#allocation7 + $0x2c] ss:$16 sps:$4 sm:$0xff]  }
  0x60   :  { %v2807_v59 = vld [vmem:[#allocation7 + $0x80] ss:$16 sps:$4 sm:$0xff]   ;;  %v2815_v60 = vld [vmem:[#allocation7 + $0xa4] ss:$16 sps:$4 sm:$0xff]   ;;  %v2792_v3 = vld [vmem:[#allocation7 + $0x28] ss:$16 sps:$4 sm:$0xff]  }
  0x61   :  { %452 = vmatpush1.bf16.msra.mxu1 %v2749_v26  ;;  %v2813_v63 = vld [vmem:[#allocation7 + $0xa0] ss:$16 sps:$4 sm:$0xff]   ;;  %v2827_v4 = vld [vmem:[#allocation7 + $0xe4] ss:$16 sps:$4 sm:$0xff]   ;;  %v2800_v5 = vld [vmem:[#allocation7 + $0x4c] ss:$16 sps:$4 sm:$0xff]  }
  0x62   :  { %413 = vmatpush1.bf16.msra.mxu0 %v2728_v17  ;;  %453 = vmatprep.subr.bf16.mxu1 %v2750_v27  ;;  %v2819_v2 = vld [vmem:[#allocation7 + $0xc0] ss:$16 sps:$4 sm:$0xff]   ;;  %v2798_v7 = vld [vmem:[#allocation7 + $0x48] ss:$16 sps:$4 sm:$0xff]   ;;  %v2833_v8 = vld [vmem:[#allocation7 + $0x104] ss:$16 sps:$4 sm:$0xff]  }
  0x63   :  { %414 = vmatprep.subr.bf16.mxu0 %v2729_v20  ;;  %v2825_v6 = vld [vmem:[#allocation7 + $0xe0] ss:$16 sps:$4 sm:$0xff]   ;;  %v2806_v9 = vld [vmem:[#allocation7 + $0x6c] ss:$16 sps:$4 sm:$0xff]   ;;  %v2804_v11 = vld [vmem:[#allocation7 + $0x68] ss:$16 sps:$4 sm:$0xff]  }
  0x64   :  { %v2831_v10 = vld [vmem:[#allocation7 + $0x100] ss:$16 sps:$4 sm:$0xff]   ;;  %v2839_v12 = vld [vmem:[#allocation7 + $0x124] ss:$16 sps:$4 sm:$0xff]   ;;  %v2812_v13 = vld [vmem:[#allocation7 + $0x8c] ss:$16 sps:$4 sm:$0xff]  }
  0x65   :  { %454 = vmatpush1.bf16.msra.mxu1 %v2752_v30  ;;  %v2837_v14 = vld [vmem:[#allocation7 + $0x120] ss:$16 sps:$4 sm:$0xff]   ;;  %v2810_v15 = vld [vmem:[#allocation7 + $0x88] ss:$16 sps:$4 sm:$0xff]   ;;  %v2845_v16 = vld [vmem:[#allocation7 + $0x144] ss:$16 sps:$4 sm:$0xff]  }
  0x66   :  { %415 = vmatpush1.bf16.msra.mxu0 %v2731_v21  ;;  %455 = vmatprep.subr.bf16.mxu1 %v2753_v31  ;;  %v2818_v17 = vld [vmem:[#allocation7 + $0xac] ss:$16 sps:$4 sm:$0xff]   ;;  %v2843_v18 = vld [vmem:[#allocation7 + $0x140] ss:$16 sps:$4 sm:$0xff]   ;;  %v2816_v19 = vld [vmem:[#allocation7 + $0xa8] ss:$16 sps:$4 sm:$0xff]  }
  0x67   :  { %416 = vmatprep.subr.bf16.mxu0 %v2732_v24  ;;  %v2824_v20 = vld [vmem:[#allocation7 + $0xcc] ss:$16 sps:$4 sm:$0xff]   ;;  %v2822_v21 = vld [vmem:[#allocation7 + $0xc8] ss:$16 sps:$4 sm:$0xff]   ;;  %v2851_v30 = vld [vmem:[#allocation7 + $0x164] ss:$16 sps:$4 sm:$0xff]  }
  0x68   :  { %v2830_v22 = vld [vmem:[#allocation7 + $0xec] ss:$16 sps:$4 sm:$0xff]   ;;  %v2828_v23 = vld [vmem:[#allocation7 + $0xe8] ss:$16 sps:$4 sm:$0xff]   ;;  %s2351_s9 = sshll.u32 %s3256_s8, 4  ;;  %s2352_s9 = int_to_ptr.vmem [resolvable:$true] %s2351_s9 }
  0x69   :  { %456 = vmatpush1.bf16.msra.mxu1 %v2755_v34  ;;  %v2836_v24 = vld [vmem:[#allocation7 + $0x10c] ss:$16 sps:$4 sm:$0xff]   ;;  %v2840_v27 = vld [vmem:[#allocation7 + $0x128] ss:$16 sps:$4 sm:$0xff]   ;;  %v2857_v34 = vld [vmem:[#allocation7 + $0x184] ss:$16 sps:$4 sm:$0xff]   ;;  %p3220_p5 = scmp.lt.s32.totalorder %s2352_s9, %s2352_s9 }
  0x6a   :  { %417 = vmatpush1.bf16.msra.mxu0 %v2734_v25  ;;  %457 = vmatprep.subr.bf16.mxu1 %v2756_v35  ;;  %v2834_v25 = vld [vmem:[#allocation7 + $0x108] ss:$16 sps:$4 sm:$0xff]   ;;  %v2842_v26 = vld [vmem:[#allocation7 + $0x12c] ss:$16 sps:$4 sm:$0xff]  }
  0x6b   :  { %484 = vmatprep.subr.bf16.mxu0 %v2761_v28  ;;  %v2848_v28 = vld [vmem:[#allocation7 + $0x14c] ss:$16 sps:$4 sm:$0xff]  }
  0x6c   :  { %v2854_v31 = vld [vmem:[#allocation7 + $0x16c] ss:$16 sps:$4 sm:$0xff]  }
  0x6d   :  { %435 = vmatmul.mubr.bf16.vlgmr.msra.gmra.mrb[0].mxu0 %v3347_v29  ;;  %458 = vmatpush1.bf16.msra.mxu1 %v2758_v38  ;;  %v2860_v35 = vld [vmem:[#allocation7 + $0x18c] ss:$16 sps:$4 sm:$0xff]   ;;  %v2863_v38 = vld [vmem:[#allocation7 + $0x1a4] ss:$16 sps:$4 sm:$0xff]  }
  0x6e   :  { %485 = vmatpush1.bf16.msra.mxu0 %v2759_v32  ;;  %516 = vmatprep.mubr.bf16.mxu0 %v3255_v0  ;;  %v2821_v0 = vld [vmem:[#allocation7 + $0xc4] ss:$16 sps:$4 sm:$0xff]   ;;  %v2849_v32 = vld [vmem:[#allocation7 + $0x160] ss:$16 sps:$4 sm:$0xff]  }
  0x6f   :  { %486 = vmatprep.subr.bf16.mxu0 %v2764_v33  ;;  %1729 = vmatprep.subr.bf16.mxu1 %v2785_v40  ;;  %v2852_v33 = vld [vmem:[#allocation7 + $0x168] ss:$16 sps:$4 sm:$0xff]   ;;  %v2861_v40 = vld [vmem:[#allocation7 + $0x1a0] ss:$16 sps:$4 sm:$0xff]  }
  0x70   :  { %476 = vmatmul.mubr.bf16.vlgmr.msra.gmra.mrb[0].mxu1 %v3347_v29 }
  0x71   :  { %1730 = vmatpush1.bf16.msra.mxu1 %v2783_v43  ;;  %v2872_v43 = vld [vmem:[#allocation7 + $0x1cc] ss:$16 sps:$4 sm:$0xff]  }
  0x72   :  { %487 = vmatpush1.bf16.msra.mxu0 %v2762_v36  ;;  %1731 = vmatprep.subr.bf16.mxu1 %v2791_v44  ;;  %v2855_v36 = vld [vmem:[#allocation7 + $0x180] ss:$16 sps:$4 sm:$0xff]  }
  0x73   :  { %488 = vmatprep.subr.bf16.mxu0 %v2767_v37  ;;  %v2858_v37 = vld [vmem:[#allocation7 + $0x188] ss:$16 sps:$4 sm:$0xff]   ;;  %v2867_v44 = vld [vmem:[#allocation7 + $0x1c0] ss:$16 sps:$4 sm:$0xff]  }
  0x75   :  { %1732 = vmatpush1.bf16.msra.mxu1 %v2789_v47  ;;  %v2878_v47 = vld [vmem:[#allocation7 + $0x1ec] ss:$16 sps:$4 sm:$0xff]  }
  0x76   :  { %489 = vmatpush1.bf16.msra.mxu0 %v2765_v39  ;;  %1733 = vmatprep.subr.bf16.mxu1 %v2797_v48  ;;  %v2866_v39 = vld [vmem:[#allocation7 + $0x1ac] ss:$16 sps:$4 sm:$0xff]   ;;  %v2873_v48 = vld [vmem:[#allocation7 + $0x1e0] ss:$16 sps:$4 sm:$0xff]  }
  0x77   :  { %490 = vmatprep.subr.bf16.mxu0 %v2770_v41  ;;  %v2864_v41 = vld [vmem:[#allocation7 + $0x1a8] ss:$16 sps:$4 sm:$0xff]  }
  0x79   :  { %1734 = vmatpush1.bf16.msra.mxu1 %v2795_v51  ;;  %v2884_v51 = vld [vmem:[#allocation7 + $0x20c] ss:$16 sps:$4 sm:$0xff]  }
  0x7a   :  { %491 = vmatpush1.bf16.msra.mxu0 %v2768_v42  ;;  %1735 = vmatprep.subr.bf16.mxu1 %v2803_v52  ;;  %v2869_v42 = vld [vmem:[#allocation7 + $0x1c4] ss:$16 sps:$4 sm:$0xff]   ;;  %v132_v52 = vlaneseq }
  0x7b   :  { %492 = vmatprep.subr.bf16.mxu0 %v2773_v45  ;;  %v2870_v45 = vld [vmem:[#allocation7 + $0x1c8] ss:$16 sps:$4 sm:$0xff]  }
  0x7d   :  { %1736 = vmatpush1.bf16.msra.mxu1 %v2801_v55  ;;  %v3359_v55 = vld [vmem:[%s3414_s2] sm:$0x3f] }
  0x7e   :  { %493 = vmatpush1.bf16.msra.mxu0 %v2771_v46  ;;  %1737 = vmatprep.subr.bf16.mxu1 %v2809_v56  ;;  %v2875_v46 = vld [vmem:[#allocation7 + $0x1e4] ss:$16 sps:$4 sm:$0xff]  }
  0x7f   :  { %494 = vmatprep.subr.bf16.mxu0 %v2776_v49  ;;  %v2876_v49 = vld [vmem:[#allocation7 + $0x1e8] ss:$16 sps:$4 sm:$0xff]  }
  0x81   :  { %1738 = vmatpush1.bf16.msra.mxu1 %v2807_v59 }
  0x82   :  { %495 = vmatpush1.bf16.msra.mxu0 %v2774_v50  ;;  %1739 = vmatprep.subr.bf16.mxu1 %v2815_v60  ;;  %v2881_v50 = vld [vmem:[#allocation7 + $0x204] ss:$16 sps:$4 sm:$0xff]  }
  0x83   :  { %496 = vmatprep.subr.bf16.mxu0 %v2779_v53  ;;  %v3353_v53 = vshrl.u32 %v132_v52, 7  ;;  %v2918_v52 = vld [vmem:[#allocation7 + $0x2c8] ss:$16 sps:$4 sm:$0xff]  }
  0x85   :  { %1740 = vmatpush1.bf16.msra.mxu1 %v2813_v63  ;;  %v138_v56 = vsub.s32 1, %v3353_v53 }
  0x86   :  { %497 = vmatpush1.bf16.msra.mxu0 %v2777_v54  ;;  %1741 = vmatprep.subr.bf16.mxu1 %v2821_v0  ;;  %v134_v54 = vsub.s32 0, %v3353_v53 }
  0x87   :  { %498 = vmatprep.subr.bf16.mxu0 %v2782_v57 }
  0x88   :  { %v135_v57 = vrot.slane %v3359_v55, %v134_v54 }
  0x89   :  { %1742 = vmatpush1.bf16.msra.mxu1 %v2819_v2 }
  0x8a   :  { %499 = vmatpush1.bf16.msra.mxu0 %v2780_v58  ;;  %1743 = vmatprep.subr.bf16.mxu1 %v2827_v4  ;;  %v139_v58 = vrot.slane %v3359_v55, %v138_v56 }
  0x8b   :  { %1852 = vmatprep.subr.bf16.mxu0 %v2788_v61 }
  0x8d   :  { %517 = vmatmul.mubr.bf16.vlgmr.msra.gmra.mrb[4].mxu0 %v3347_v29  ;;  %1744 = vmatpush1.bf16.msra.mxu1 %v2825_v6  ;;  %v2846_v29 = vld [vmem:[#allocation7 + $0x148] ss:$16 sps:$4 sm:$0xff]  }
  0x8e   :  { %1853 = vmatpush1.bf16.msra.mxu0 %v2786_v62  ;;  %1745 = vmatprep.subr.bf16.mxu1 %v2833_v8 }
  0x8f   :  { %1854 = vmatprep.subr.bf16.mxu0 %v2794_v1 }
  0x91   :  { %1746 = vmatpush1.bf16.msra.mxu1 %v2831_v10 }
  0x92   :  { %1855 = vmatpush1.bf16.msra.mxu0 %v2792_v3  ;;  %1747 = vmatprep.subr.bf16.mxu1 %v2839_v12  ;;  %v146_v3 = vsub.s32 3, %v3353_v53 }
  0x93   :  { %1856 = vmatprep.subr.bf16.mxu0 %v2800_v5 }
  0x94   :  { %v147_v4 = vrot.slane %v3359_v55, %v146_v3 }
  0x95   :  { %1748 = vmatpush1.bf16.msra.mxu1 %v2837_v14 }
  0x96   :  { %1857 = vmatpush1.bf16.msra.mxu0 %v2798_v7  ;;  %1749 = vmatprep.subr.bf16.mxu1 %v2845_v16 }
  0x97   :  { %1858 = vmatprep.subr.bf16.mxu0 %v2806_v9 }
  0x99   :  { %1750 = vmatpush1.bf16.msra.mxu1 %v2843_v18  ;;  %v2879_v18 = vld [vmem:[#allocation7 + $0x200] ss:$16 sps:$4 sm:$0xff]  }
  0x9a   :  { %1859 = vmatpush1.bf16.msra.mxu0 %v2804_v11  ;;  %1751 = vmatprep.subr.bf16.mxu1 %v2851_v30  ;;  %v2894_v30 = vld [vmem:[#allocation7 + $0x248] ss:$16 sps:$4 sm:$0xff]  }
  0x9b   :  { %1860 = vmatprep.subr.bf16.mxu0 %v2812_v13 }
  0x9d   :  { %1752 = vmatpush1.bf16.msra.mxu1 %v2849_v32  ;;  %v2902_v32 = vld [vmem:[#allocation7 + $0x26c] ss:$16 sps:$4 sm:$0xff]  }
  0x9e   :  { %1861 = vmatpush1.bf16.msra.mxu0 %v2810_v15  ;;  %1753 = vmatprep.subr.bf16.mxu1 %v2857_v34 }
  0x9f   :  { %1862 = vmatprep.subr.bf16.mxu0 %v2818_v17 }
  0xa1   :  { %1754 = vmatpush1.bf16.msra.mxu1 %v2855_v36  ;;  %v2897_v36 = vld [vmem:[#allocation7 + $0x260] ss:$16 sps:$4 sm:$0xff]  }
  0xa2   :  { %1863 = vmatpush1.bf16.msra.mxu0 %v2816_v19  ;;  %1755 = vmatprep.subr.bf16.mxu1 %v2863_v38  ;;  %v2882_v19 = vld [vmem:[#allocation7 + $0x208] ss:$16 sps:$4 sm:$0xff]  }
  0xa3   :  { %1864 = vmatprep.subr.bf16.mxu0 %v2824_v20 }
  0xa5   :  { %1756 = vmatpush1.bf16.msra.mxu1 %v2861_v40  ;;  %v2908_v40 = vld [vmem:[#allocation7 + $0x28c] ss:$16 sps:$4 sm:$0xff]  }
  0xa6   :  { %1865 = vmatpush1.bf16.msra.mxu0 %v2822_v21  ;;  %1757 = vmatprep.subr.bf16.mxu1 %v2869_v42  ;;  %v2887_v21 = vld [vmem:[#allocation7 + $0x224] ss:$16 sps:$4 sm:$0xff]  }
  0xa7   :  { %1866 = vmatprep.subr.bf16.mxu0 %v2830_v22  ;;  %v2890_v22 = vld [vmem:[#allocation7 + $0x22c] ss:$16 sps:$4 sm:$0xff]  }
  0xa9   :  { %1758 = vmatpush1.bf16.msra.mxu1 %v2867_v44  ;;  %v2906_v44 = vld [vmem:[#allocation7 + $0x288] ss:$16 sps:$4 sm:$0xff]  }
  0xaa   :  { %1867 = vmatpush1.bf16.msra.mxu0 %v2828_v23  ;;  %1759 = vmatprep.subr.bf16.mxu1 %v2875_v46  ;;  %v2885_v23 = vld [vmem:[#allocation7 + $0x220] ss:$16 sps:$4 sm:$0xff]   ;;  %v2914_v46 = vld [vmem:[#allocation7 + $0x2ac] ss:$16 sps:$4 sm:$0xff]  }
  0xab   :  { %1868 = vmatprep.subr.bf16.mxu0 %v2836_v24  ;;  %v2888_v24 = vld [vmem:[#allocation7 + $0x228] ss:$16 sps:$4 sm:$0xff]  }
  0xad   :  { %1760 = vmatpush1.bf16.msra.mxu1 %v2873_v48  ;;  %v2912_v48 = vld [vmem:[#allocation7 + $0x2a8] ss:$16 sps:$4 sm:$0xff]  }
  0xae   :  { %1869 = vmatpush1.bf16.msra.mxu0 %v2834_v25  ;;  %1770 = vmatprep.subr.bf16.mxu1 %v2881_v50  ;;  %v2893_v25 = vld [vmem:[#allocation7 + $0x244] ss:$16 sps:$4 sm:$0xff]   ;;  %v2920_v50 = vld [vmem:[#allocation7 + $0x2cc] ss:$16 sps:$4 sm:$0xff]  }
  0xaf   :  { %1870 = vmatprep.subr.bf16.mxu0 %v2842_v26  ;;  %v2896_v26 = vld [vmem:[#allocation7 + $0x24c] ss:$16 sps:$4 sm:$0xff]  }
  0xb2   :  { %1871 = vmatpush1.bf16.msra.mxu0 %v2840_v27 }
  0xb3   :  { %1872 = vmatprep.subr.bf16.mxu0 %v2848_v28 }
  0xb6   :  { %1873 = vmatpush1.bf16.msra.mxu0 %v2846_v29  ;;  %v2891_v29 = vld [vmem:[#allocation7 + $0x240] ss:$16 sps:$4 sm:$0xff]  }
  0xb7   :  { %1874 = vmatprep.subr.bf16.mxu0 %v2854_v31  ;;  %v2899_v31 = vld [vmem:[#allocation7 + $0x264] ss:$16 sps:$4 sm:$0xff]  }
  0xba   :  { %1875 = vmatpush1.bf16.msra.mxu0 %v2852_v33 }
  0xbb   :  { %1876 = vmatprep.subr.bf16.mxu0 %v2860_v35 }
  0xbe   :  { %1877 = vmatpush1.bf16.msra.mxu0 %v2858_v37  ;;  %v2900_v37 = vld [vmem:[#allocation7 + $0x268] ss:$16 sps:$4 sm:$0xff]  }
  0xbf   :  { %1878 = vmatprep.subr.bf16.mxu0 %v2866_v39  ;;  %v2905_v39 = vld [vmem:[#allocation7 + $0x284] ss:$16 sps:$4 sm:$0xff]  }
  0xc2   :  { %1879 = vmatpush1.bf16.msra.mxu0 %v2864_v41 }
  0xc3   :  { %1880 = vmatprep.subr.bf16.mxu0 %v2872_v43  ;;  %v2903_v43 = vld [vmem:[#allocation7 + $0x280] ss:$16 sps:$4 sm:$0xff]  }
  0xc6   :  { %1881 = vmatpush1.bf16.msra.mxu0 %v2870_v45  ;;  %v2911_v45 = vld [vmem:[#allocation7 + $0x2a4] ss:$16 sps:$4 sm:$0xff]  }
  0xc7   :  { %1882 = vmatprep.subr.bf16.mxu0 %v2878_v47  ;;  %v2909_v47 = vld [vmem:[#allocation7 + $0x2a0] ss:$16 sps:$4 sm:$0xff]  }
  0xca   :  { %1883 = vmatpush1.bf16.msra.mxu0 %v2876_v49  ;;  %v2917_v49 = vld [vmem:[#allocation7 + $0x2c4] ss:$16 sps:$4 sm:$0xff]  }
  0xcb   :  { %1893 = vmatprep.subr.bf16.mxu0 %v2884_v51  ;;  %v2915_v51 = vld [vmem:[#allocation7 + $0x2c0] ss:$16 sps:$4 sm:$0xff]  }
 0x140   :  { %v436_v59 = vpop.f32.mrb[0].mxu0 }
 0x141   :  { %v437_v60 = vadd.f32 %v436_v59, %v135_v57  ;;  %v438_v61 = vpop.f32.mrb[1].mxu0  ;;  %v2923_v57 = vld [vmem:[#allocation7 + $0x2e4] ss:$16 sps:$4 sm:$0xff]   ;;  %v142_v59 = vsub.s32 2, %v3353_v53 }
 0x142   :  { %v439_v62 = vadd.f32 %v438_v61, %v139_v58  ;;  %v440_v63 = vpop.f32.mrb[2].mxu0  ;;  %v2926_v58 = vld [vmem:[#allocation7 + $0x2ec] ss:$16 sps:$4 sm:$0xff]   ;;  %v2924_v61 = vld [vmem:[#allocation7 + $0x2e8] ss:$16 sps:$4 sm:$0xff]  }
 0x143   :  { %v525_v0 = vmul.f32 0.5, %v437_v60  ;;  %v441_v1 = vpop.f32.mrb[3].mxu0  ;;  %v3372_v5 = vpop.f32.mrb[0].mxu1  ;;  %v2921_v60 = vld [vmem:[#allocation7 + $0x2e0] ss:$16 sps:$4 sm:$0xff]  }
 0x144   :  { %v526_v2 = vmul.f32 0.5, %v439_v62  ;;  %v479_v6 = vpop.f32.mrb[1].mxu1  ;;  %v2929_v62 = vld [vmem:[#allocation7 + $0x304] ss:$16 sps:$4 sm:$0xff]   ;;  %v2932_v63 = vld [vmem:[#allocation7 + $0x30c] ss:$16 sps:$4 sm:$0xff]   ;;  %v143_v1 = vrot.slane %v3359_v55, %v142_v59 }
 0x145   :  { %3103 = vtanh.f32 %v525_v0  ;;  %v480_v7 = vadd.f32 %v479_v6, %v147_v4  ;;  %v481_v8 = vpop.f32.mrb[2].mxu1  ;;  %v154_v0 = vsub.s32 5, %v3353_v53  ;;  %v2930_v4 = vld [vmem:[#allocation7 + $0x308] ss:$16 sps:$4 sm:$0xff]   ;;  %v2935_v6 = vld [vmem:[#allocation7 + $0x324] ss:$16 sps:$4 sm:$0xff]  }
 0x146   :  { %3105 = vtanh.f32 %v526_v2  ;;  %v482_v9 = vpop.f32.mrb[3].mxu1  ;;  %v2927_v2 = vld [vmem:[#allocation7 + $0x300] ss:$16 sps:$4 sm:$0xff]  }
 0x147   :  { %v528_v11 = vmul.f32 0.5, %v480_v7  ;;  %v2938_v7 = vld [vmem:[#allocation7 + $0x32c] ss:$16 sps:$4 sm:$0xff]   ;;  %v155_v8 = vrot.slane %v3359_v55, %v154_v0  ;;  %v478_v9 = vadd.f32 %v3372_v5, %v143_v1  ;;  %v2945_v5 = vld [vmem:[#allocation7 + $0x360] ss:$16 sps:$4 sm:$0xff]  }
 0x148   :  { %v2995_v0 = vld [vmem:[#allocation7 + $0x464] ss:$16 sps:$4 sm:$0xff]   ;;  %v2998_v1 = vld [vmem:[#allocation7 + $0x46c] ss:$16 sps:$4 sm:$0xff]  }
 0x149   :  { %3107 = vtanh.f32 %v528_v11  ;;  %v2936_v11 = vld [vmem:[#allocation7 + $0x328] ss:$16 sps:$4 sm:$0xff]  }
 0x14f   :  { %v3104_v10 = vpop.eup %3103 }
 0x150   :  { %v3106_v12 = vpop.eup %3105  ;;  %v537_v13 = vmul.f32 0.5, %v3104_v10  ;;  %v2933_v10 = vld [vmem:[#allocation7 + $0x320] ss:$16 sps:$4 sm:$0xff]  }
 0x151   :  { %v538_v14 = vmul.f32 0.5, %v3106_v12  ;;  %v2941_v12 = vld [vmem:[#allocation7 + $0x344] ss:$16 sps:$4 sm:$0xff]  }
 0x152   :  { %v543_v15 = vadd.f32 0.5, %v537_v13  ;;  %v2944_v13 = vld [vmem:[#allocation7 + $0x34c] ss:$16 sps:$4 sm:$0xff]  }
 0x153   :  { %v544_v16 = vadd.f32 0.5, %v538_v14  ;;  %v3108_v27 = vpop.eup %3107 }
 0x154   :  { %v549_v20 = vpack.c.bf16 %v543_v15, %v543_v15  ;;  %v540_v28 = vmul.f32 0.5, %v3108_v27  ;;  %v527_v15 = vmul.f32 0.5, %v478_v9  ;;  %v2962_v27 = vld [vmem:[#allocation7 + $0x3ac] ss:$16 sps:$4 sm:$0xff]   ;;  %v3002_v9 = vld [vmem:[#allocation7 + $0x488] ss:$16 sps:$4 sm:$0xff]  }
 0x155   :  { %v550_v17 = vpack.c.bf16 %v544_v16, %v544_v16  ;;  %v2939_v16 = vld [vmem:[#allocation7 + $0x340] ss:$16 sps:$4 sm:$0xff]  }
 0x156   :  { %v546_v33 = vadd.f32 0.5, %v540_v28  ;;  %3109 = vtanh.f32 %v527_v15  ;;  %v3016_v15 = vld [vmem:[#allocation7 + $0x4cc] ss:$16 sps:$4 sm:$0xff]  }
 0x157   :  { %1761 = vmatprep.mubr.bf16.mxu1 %v550_v17  ;;  %1884 = vmatprep.mubr.bf16.mxu0 %v550_v17  ;;  %v2942_v17 = vld [vmem:[#allocation7 + $0x348] ss:$16 sps:$4 sm:$0xff]  }
 0x158   :  { %1762 = vmatmul.mubr.bf16.vlgmr.msra.gmra.mrb[4].mxu1 %v549_v20  ;;  %1885 = vmatmul.mubr.bf16.vlgmr.msra.gmra.mrb[8].mxu0 %v549_v20  ;;  %v552_v34 = vpack.c.bf16 %v546_v33, %v546_v33 }
 0x159   :  { %1771 = vmatpush1.bf16.msra.mxu1 %v2879_v18  ;;  %1894 = vmatpush1.bf16.msra.mxu0 %v2882_v19  ;;  %v2947_v18 = vld [vmem:[#allocation7 + $0x364] ss:$16 sps:$4 sm:$0xff]   ;;  %v2950_v19 = vld [vmem:[#allocation7 + $0x36c] ss:$16 sps:$4 sm:$0xff]  }
 0x15a   :  { %1772 = vmatprep.subr.bf16.mxu1 %v2887_v21  ;;  %1895 = vmatprep.subr.bf16.mxu0 %v2890_v22  ;;  %v2948_v21 = vld [vmem:[#allocation7 + $0x368] ss:$16 sps:$4 sm:$0xff]   ;;  %v2953_v22 = vld [vmem:[#allocation7 + $0x384] ss:$16 sps:$4 sm:$0xff]  }
 0x15b   :  { %1802 = vmatprep.mubr.bf16.mxu1 %v552_v34  ;;  %1925 = vmatprep.mubr.bf16.mxu0 %v552_v34 }
 0x15d   :  { %1773 = vmatpush1.bf16.msra.mxu1 %v2885_v23  ;;  %1896 = vmatpush1.bf16.msra.mxu0 %v2888_v24  ;;  %v2956_v23 = vld [vmem:[#allocation7 + $0x38c] ss:$16 sps:$4 sm:$0xff]   ;;  %v2951_v24 = vld [vmem:[#allocation7 + $0x380] ss:$16 sps:$4 sm:$0xff]  }
 0x15e   :  { %1774 = vmatprep.subr.bf16.mxu1 %v2893_v25  ;;  %1897 = vmatprep.subr.bf16.mxu0 %v2896_v26  ;;  %v2954_v25 = vld [vmem:[#allocation7 + $0x388] ss:$16 sps:$4 sm:$0xff]   ;;  %v2959_v26 = vld [vmem:[#allocation7 + $0x3a4] ss:$16 sps:$4 sm:$0xff]  }
 0x160   :  { %v3374_v35 = vpop.f32.mrb[4].mxu0  ;;  %v3110_v28 = vpop.eup %3109 }
 0x161   :  { %1775 = vmatpush1.bf16.msra.mxu1 %v2891_v29  ;;  %1898 = vmatpush1.bf16.msra.mxu0 %v2894_v30  ;;  %v520_v38 = vpop.f32.mrb[5].mxu0  ;;  %v2957_v29 = vld [vmem:[#allocation7 + $0x3a0] ss:$16 sps:$4 sm:$0xff]   ;;  %v2960_v30 = vld [vmem:[#allocation7 + $0x3a8] ss:$16 sps:$4 sm:$0xff]   ;;  %v539_v34 = vmul.f32 0.5, %v3110_v28 }
 0x162   :  { %1776 = vmatprep.subr.bf16.mxu1 %v2899_v31  ;;  %1899 = vmatprep.subr.bf16.mxu0 %v2902_v32  ;;  %v522_v41 = vpop.f32.mrb[6].mxu0  ;;  %v521_v14 = vadd.f32 %v520_v38, %v155_v8  ;;  %v2965_v31 = vld [vmem:[#allocation7 + $0x3c4] ss:$16 sps:$4 sm:$0xff]   ;;  %v2968_v32 = vld [vmem:[#allocation7 + $0x3cc] ss:$16 sps:$4 sm:$0xff]  }
 0x163   :  { %v523_v42 = vpop.f32.mrb[7].mxu0  ;;  %v2971_v38 = vld [vmem:[#allocation7 + $0x3e4] ss:$16 sps:$4 sm:$0xff]   ;;  %v545_v41 = vadd.f32 0.5, %v539_v34  ;;  %v2999_v8 = vld [vmem:[#allocation7 + $0x480] ss:$16 sps:$4 sm:$0xff]  }
 0x164   :  { %v530_v20 = vmul.f32 0.5, %v521_v14  ;;  %v2969_v42 = vld [vmem:[#allocation7 + $0x3e0] ss:$16 sps:$4 sm:$0xff]   ;;  %v3013_v14 = vld [vmem:[#allocation7 + $0x4c4] ss:$16 sps:$4 sm:$0xff]  }
 0x165   :  { %1777 = vmatpush1.bf16.msra.mxu1 %v2897_v36  ;;  %1900 = vmatpush1.bf16.msra.mxu0 %v2900_v37  ;;  %v2963_v36 = vld [vmem:[#allocation7 + $0x3c0] ss:$16 sps:$4 sm:$0xff]   ;;  %v2966_v37 = vld [vmem:[#allocation7 + $0x3c8] ss:$16 sps:$4 sm:$0xff]   ;;  %v3034_v28 = vld [vmem:[#allocation7 + $0x52c] ss:$16 sps:$4 sm:$0xff]  }
 0x166   :  { %1778 = vmatprep.subr.bf16.mxu1 %v2905_v39  ;;  %1901 = vmatprep.subr.bf16.mxu0 %v2908_v40  ;;  %3111 = vtanh.f32 %v530_v20  ;;  %v2974_v39 = vld [vmem:[#allocation7 + $0x3ec] ss:$16 sps:$4 sm:$0xff]   ;;  %v3017_v20 = vld [vmem:[#allocation7 + $0x4e0] ss:$16 sps:$4 sm:$0xff]  }
 0x169   :  { %1779 = vmatpush1.bf16.msra.mxu1 %v2903_v43  ;;  %1902 = vmatpush1.bf16.msra.mxu0 %v2906_v44  ;;  %v2972_v43 = vld [vmem:[#allocation7 + $0x3e8] ss:$16 sps:$4 sm:$0xff]   ;;  %v2977_v44 = vld [vmem:[#allocation7 + $0x404] ss:$16 sps:$4 sm:$0xff]  }
 0x16a   :  { %1780 = vmatprep.subr.bf16.mxu1 %v2911_v45  ;;  %1903 = vmatprep.subr.bf16.mxu0 %v2914_v46  ;;  %v2980_v45 = vld [vmem:[#allocation7 + $0x40c] ss:$16 sps:$4 sm:$0xff]  }
 0x16d   :  { %1781 = vmatpush1.bf16.msra.mxu1 %v2909_v47  ;;  %1904 = vmatpush1.bf16.msra.mxu0 %v2912_v48  ;;  %v551_v47 = vpack.c.bf16 %v545_v41, %v545_v41  ;;  %v2975_v48 = vld [vmem:[#allocation7 + $0x400] ss:$16 sps:$4 sm:$0xff]   ;;  %v3052_v41 = vld [vmem:[#allocation7 + $0x58c] ss:$16 sps:$4 sm:$0xff]  }
 0x16e   :  { %1782 = vmatprep.subr.bf16.mxu1 %v2917_v49  ;;  %1905 = vmatprep.subr.bf16.mxu0 %v2920_v50  ;;  %v2978_v49 = vld [vmem:[#allocation7 + $0x408] ss:$16 sps:$4 sm:$0xff]   ;;  %v2983_v50 = vld [vmem:[#allocation7 + $0x424] ss:$16 sps:$4 sm:$0xff]  }
 0x170   :  { %v3112_v33 = vpop.eup %3111 }
 0x171   :  { %1783 = vmatpush1.bf16.msra.mxu1 %v2915_v51  ;;  %1906 = vmatpush1.bf16.msra.mxu0 %v2918_v52  ;;  %v542_v40 = vmul.f32 0.5, %v3112_v33  ;;  %v2986_v51 = vld [vmem:[#allocation7 + $0x42c] ss:$16 sps:$4 sm:$0xff]  }
 0x172   :  { %1784 = vmatprep.subr.bf16.mxu1 %v2923_v57  ;;  %1907 = vmatprep.subr.bf16.mxu0 %v2926_v58  ;;  %v2981_v57 = vld [vmem:[#allocation7 + $0x420] ss:$16 sps:$4 sm:$0xff]   ;;  %v2984_v58 = vld [vmem:[#allocation7 + $0x428] ss:$16 sps:$4 sm:$0xff]   ;;  %v3040_v33 = vld [vmem:[#allocation7 + $0x54c] ss:$16 sps:$4 sm:$0xff]  }
 0x173   :  { %v548_v46 = vadd.f32 0.5, %v542_v40  ;;  %v3044_v40 = vld [vmem:[#allocation7 + $0x568] ss:$16 sps:$4 sm:$0xff]  }
 0x175   :  { %1785 = vmatpush1.bf16.msra.mxu1 %v2921_v60  ;;  %1908 = vmatpush1.bf16.msra.mxu0 %v2924_v61  ;;  %v554_v52 = vpack.c.bf16 %v548_v46, %v548_v46  ;;  %v2989_v60 = vld [vmem:[#allocation7 + $0x444] ss:$16 sps:$4 sm:$0xff]   ;;  %v2992_v61 = vld [vmem:[#allocation7 + $0x44c] ss:$16 sps:$4 sm:$0xff]   ;;  %v3053_v46 = vld [vmem:[#allocation7 + $0x5a0] ss:$16 sps:$4 sm:$0xff]  }
 0x176   :  { %1786 = vmatprep.subr.bf16.mxu1 %v2929_v62  ;;  %1909 = vmatprep.subr.bf16.mxu0 %v2932_v63  ;;  %v2987_v62 = vld [vmem:[#allocation7 + $0x440] ss:$16 sps:$4 sm:$0xff]   ;;  %v2990_v63 = vld [vmem:[#allocation7 + $0x448] ss:$16 sps:$4 sm:$0xff]  }
 0x179   :  { %1787 = vmatpush1.bf16.msra.mxu1 %v2927_v2  ;;  %1910 = vmatpush1.bf16.msra.mxu0 %v2930_v4  ;;  %v2993_v2 = vld [vmem:[#allocation7 + $0x460] ss:$16 sps:$4 sm:$0xff]   ;;  %v2996_v4 = vld [vmem:[#allocation7 + $0x468] ss:$16 sps:$4 sm:$0xff]  }
 0x17a   :  { %1788 = vmatprep.subr.bf16.mxu1 %v2935_v6  ;;  %1911 = vmatprep.subr.bf16.mxu0 %v2938_v7  ;;  %v3001_v6 = vld [vmem:[#allocation7 + $0x484] ss:$16 sps:$4 sm:$0xff]   ;;  %v3004_v7 = vld [vmem:[#allocation7 + $0x48c] ss:$16 sps:$4 sm:$0xff]  }
 0x17d   :  { %1789 = vmatpush1.bf16.msra.mxu1 %v2933_v10  ;;  %1912 = vmatpush1.bf16.msra.mxu0 %v2936_v11  ;;  %v3007_v10 = vld [vmem:[#allocation7 + $0x4a4] ss:$16 sps:$4 sm:$0xff]   ;;  %v3010_v11 = vld [vmem:[#allocation7 + $0x4ac] ss:$16 sps:$4 sm:$0xff]  }
 0x17e   :  { %1790 = vmatprep.subr.bf16.mxu1 %v2941_v12  ;;  %1913 = vmatprep.subr.bf16.mxu0 %v2944_v13  ;;  %v3005_v12 = vld [vmem:[#allocation7 + $0x4a0] ss:$16 sps:$4 sm:$0xff]   ;;  %v3008_v13 = vld [vmem:[#allocation7 + $0x4a8] ss:$16 sps:$4 sm:$0xff]  }
 0x181   :  { %1791 = vmatpush1.bf16.msra.mxu1 %v2939_v16  ;;  %1914 = vmatpush1.bf16.msra.mxu0 %v2942_v17  ;;  %v3011_v16 = vld [vmem:[#allocation7 + $0x4c0] ss:$16 sps:$4 sm:$0xff]   ;;  %v3014_v17 = vld [vmem:[#allocation7 + $0x4c8] ss:$16 sps:$4 sm:$0xff]  }
 0x182   :  { %1792 = vmatprep.subr.bf16.mxu1 %v2947_v18  ;;  %1915 = vmatprep.subr.bf16.mxu0 %v2950_v19  ;;  %v3019_v18 = vld [vmem:[#allocation7 + $0x4e4] ss:$16 sps:$4 sm:$0xff]   ;;  %v3022_v19 = vld [vmem:[#allocation7 + $0x4ec] ss:$16 sps:$4 sm:$0xff]  }
 0x185   :  { %1793 = vmatpush1.bf16.msra.mxu1 %v2945_v5  ;;  %1916 = vmatpush1.bf16.msra.mxu0 %v2948_v21  ;;  %v3020_v5 = vld [vmem:[#allocation7 + $0x4e8] ss:$16 sps:$4 sm:$0xff]   ;;  %v150_v21 = vsub.s32 4, %v3353_v53 }
 0x186   :  { %1794 = vmatprep.subr.bf16.mxu1 %v2953_v22  ;;  %1917 = vmatprep.subr.bf16.mxu0 %v2956_v23  ;;  %v3025_v22 = vld [vmem:[#allocation7 + $0x504] ss:$16 sps:$4 sm:$0xff]   ;;  %v3028_v23 = vld [vmem:[#allocation7 + $0x50c] ss:$16 sps:$4 sm:$0xff]  }
 0x189   :  { %1795 = vmatpush1.bf16.msra.mxu1 %v2951_v24  ;;  %1918 = vmatpush1.bf16.msra.mxu0 %v2954_v25  ;;  %v3023_v24 = vld [vmem:[#allocation7 + $0x500] ss:$16 sps:$4 sm:$0xff]   ;;  %v3026_v25 = vld [vmem:[#allocation7 + $0x508] ss:$16 sps:$4 sm:$0xff]  }
 0x18a   :  { %1796 = vmatprep.subr.bf16.mxu1 %v2959_v26  ;;  %1919 = vmatprep.subr.bf16.mxu0 %v2962_v27  ;;  %v151_v26 = vrot.slane %v3359_v55, %v150_v21  ;;  %v3031_v27 = vld [vmem:[#allocation7 + $0x524] ss:$16 sps:$4 sm:$0xff]  }
 0x18b   :  { %v3043_v55 = vld [vmem:[#allocation7 + $0x564] ss:$16 sps:$4 sm:$0xff]  }
 0x18c   :  { %v3090_v21 = vld [vmem:[#allocation8 + $0xa0] sm:$0xff]  }
 0x18d   :  { %1797 = vmatpush1.bf16.msra.mxu1 %v2957_v29  ;;  %1920 = vmatpush1.bf16.msra.mxu0 %v2960_v30  ;;  %v3029_v29 = vld [vmem:[#allocation7 + $0x520] ss:$16 sps:$4 sm:$0xff]   ;;  %v3032_v30 = vld [vmem:[#allocation7 + $0x528] ss:$16 sps:$4 sm:$0xff]  }
 0x18e   :  { %1798 = vmatprep.subr.bf16.mxu1 %v2965_v31  ;;  %1921 = vmatprep.subr.bf16.mxu0 %v2968_v32  ;;  %v519_v31 = vadd.f32 %v3374_v35, %v151_v26  ;;  %v3037_v32 = vld [vmem:[#allocation7 + $0x544] ss:$16 sps:$4 sm:$0xff]  }
 0x18f   :  { %v3049_v35 = vld [vmem:[#allocation7 + $0x584] ss:$16 sps:$4 sm:$0xff]  }
 0x190   :  { %v529_v34 = vmul.f32 0.5, %v519_v31  ;;  %v3095_v26 = vld [vmem:[#allocation8 + $0x70] sm:$0xff]   ;;  %v3100_v31 = vld [vmem:[#allocation8 + $0xf8] sm:$0xff]  }
 0x191   :  { %1799 = vmatpush1.bf16.msra.mxu1 %v2963_v36  ;;  %1922 = vmatpush1.bf16.msra.mxu0 %v2966_v37  ;;  %v3035_v36 = vld [vmem:[#allocation7 + $0x540] ss:$16 sps:$4 sm:$0xff]   ;;  %v3038_v37 = vld [vmem:[#allocation7 + $0x548] ss:$16 sps:$4 sm:$0xff]  }
 0x192   :  { %1800 = vmatprep.subr.bf16.mxu1 %v2971_v38  ;;  %1923 = vmatprep.subr.bf16.mxu0 %v2974_v39  ;;  %v3046_v38 = vld [vmem:[#allocation7 + $0x56c] ss:$16 sps:$4 sm:$0xff]   ;;  %3113 = vtanh.f32 %v529_v34  ;;  %v3041_v39 = vld [vmem:[#allocation7 + $0x560] ss:$16 sps:$4 sm:$0xff]   ;;  %v747_v34 = vld [vmem:[%s3416_s4] sm:$0xf] }
 0x195   :  { %1801 = vmatpush1.bf16.msra.mxu1 %v2969_v42  ;;  %1924 = vmatpush1.bf16.msra.mxu0 %v2972_v43  ;;  %v3047_v42 = vld [vmem:[#allocation7 + $0x580] ss:$16 sps:$4 sm:$0xff]   ;;  %v3050_v43 = vld [vmem:[#allocation7 + $0x588] ss:$16 sps:$4 sm:$0xff]  }
 0x196   :  { %1811 = vmatprep.subr.bf16.mxu1 %v2977_v44  ;;  %1934 = vmatprep.subr.bf16.mxu0 %v2980_v45  ;;  %v3055_v44 = vld [vmem:[#allocation7 + $0x5a4] ss:$16 sps:$4 sm:$0xff]   ;;  %v3058_v45 = vld [vmem:[#allocation7 + $0x5ac] ss:$16 sps:$4 sm:$0xff]  }
 0x198   :  { %1803 = vmatmul.mubr.bf16.vlgmr.msra.gmra.mrb[4].mxu1 %v551_v47  ;;  %1926 = vmatmul.mubr.bf16.vlgmr.msra.gmra.mrb[8].mxu0 %v551_v47  ;;  %v3056_v47 = vld [vmem:[#allocation7 + $0x5a8] ss:$16 sps:$4 sm:$0xff]  }
 0x199   :  { %1812 = vmatpush1.bf16.msra.mxu1 %v2975_v48  ;;  %1935 = vmatpush1.bf16.msra.mxu0 %v2978_v49  ;;  %v3061_v48 = vld [vmem:[#allocation7 + $0x5c4] ss:$16 sps:$4 sm:$0xff]   ;;  %v3064_v49 = vld [vmem:[#allocation7 + $0x5cc] ss:$16 sps:$4 sm:$0xff]  }
 0x19a   :  { %1813 = vmatprep.subr.bf16.mxu1 %v2983_v50  ;;  %1936 = vmatprep.subr.bf16.mxu0 %v2986_v51  ;;  %v3059_v51 = vld [vmem:[#allocation7 + $0x5c0] ss:$16 sps:$4 sm:$0xff]  }
 0x19b   :  { %1843 = vmatprep.mubr.bf16.mxu1 %v554_v52  ;;  %1966 = vmatprep.mubr.bf16.mxu0 %v554_v52  ;;  %v3062_v52 = vld [vmem:[#allocation7 + $0x5c8] ss:$16 sps:$4 sm:$0xff]  }
 0x19c   :  { %v3114_v50 = vpop.eup %3113 }
 0x19d   :  { %1814 = vmatpush1.bf16.msra.mxu1 %v2981_v57  ;;  %1937 = vmatpush1.bf16.msra.mxu0 %v2984_v58  ;;  %v541_v57 = vmul.f32 0.5, %v3114_v50  ;;  %v3067_v58 = vld [vmem:[#allocation7 + $0x5e4] ss:$16 sps:$4 sm:$0xff]  }
 0x19e   :  { %1815 = vmatprep.subr.bf16.mxu1 %v2989_v60  ;;  %1938 = vmatprep.subr.bf16.mxu0 %v2992_v61  ;;  %v3070_v60 = vld [vmem:[#allocation7 + $0x5ec] ss:$16 sps:$4 sm:$0xff]   ;;  %v3065_v61 = vld [vmem:[#allocation7 + $0x5e0] ss:$16 sps:$4 sm:$0xff]  }
 0x1a1   :  { %1816 = vmatpush1.bf16.msra.mxu1 %v2987_v62  ;;  %1939 = vmatpush1.bf16.msra.mxu0 %v2990_v63  ;;  %v3068_v62 = vld [vmem:[#allocation7 + $0x5e8] ss:$16 sps:$4 sm:$0xff]   ;;  %v547_v63 = vadd.f32 0.5, %v541_v57 }
 0x1a2   :  { %1817 = vmatprep.subr.bf16.mxu1 %v2995_v0  ;;  %1940 = vmatprep.subr.bf16.mxu0 %v2998_v1  ;;  %v3071_v0 = vld [vmem:[#allocation8 + $0x40] sm:$0xff]  }
 0x1a3   :  { %v3072_v1 = vld [vmem:[#allocation8 + $0xc0] sm:$0xff]  }
 0x1a5   :  { %1818 = vmatpush1.bf16.msra.mxu1 %v2993_v2  ;;  %1941 = vmatpush1.bf16.msra.mxu0 %v2996_v4  ;;  %v3073_v2 = vld [vmem:[#allocation8] sm:$0xff]  }
 0x1a6   :  { %1819 = vmatprep.subr.bf16.mxu1 %v3001_v6  ;;  %1942 = vmatprep.subr.bf16.mxu0 %v3004_v7  ;;  %v3074_v4 = vld [vmem:[#allocation8 + $0x80] sm:$0xff]   ;;  %v553_v6 = vpack.c.bf16 %v547_v63, %v547_v63  ;;  %v3075_v7 = vld [vmem:[#allocation8 + $0x48] sm:$0xff]  }
 0x1a9   :  { %1820 = vmatpush1.bf16.msra.mxu1 %v2999_v8  ;;  %1943 = vmatpush1.bf16.msra.mxu0 %v3002_v9  ;;  %v3076_v8 = vld [vmem:[#allocation8 + $0xc8] sm:$0xff]  }
 0x1aa   :  { %1821 = vmatprep.subr.bf16.mxu1 %v3007_v10  ;;  %1944 = vmatprep.subr.bf16.mxu0 %v3010_v11  ;;  %v3077_v9 = vld [vmem:[#allocation8 + $0x8] sm:$0xff]   ;;  %v3079_v11 = vld [vmem:[#allocation8 + $0x50] sm:$0xff]  }
 0x1ab   :  { %v3078_v10 = vld [vmem:[#allocation8 + $0x88] sm:$0xff]  }
 0x1ad   :  { %1822 = vmatpush1.bf16.msra.mxu1 %v3005_v12  ;;  %1945 = vmatpush1.bf16.msra.mxu0 %v3008_v13  ;;  %v3080_v12 = vld [vmem:[#allocation8 + $0xd0] sm:$0xff]  }
 0x1ae   :  { %1823 = vmatprep.subr.bf16.mxu1 %v3013_v14  ;;  %1946 = vmatprep.subr.bf16.mxu0 %v3016_v15  ;;  %v3081_v13 = vld [vmem:[#allocation8 + $0x10] sm:$0xff]   ;;  %v3083_v15 = vld [vmem:[#allocation8 + $0x58] sm:$0xff]  }
 0x1af   :  { %v3082_v14 = vld [vmem:[#allocation8 + $0x90] sm:$0xff]  }
 0x1b1   :  { %1824 = vmatpush1.bf16.msra.mxu1 %v3011_v16  ;;  %1947 = vmatpush1.bf16.msra.mxu0 %v3014_v17  ;;  %v3084_v16 = vld [vmem:[#allocation8 + $0xd8] sm:$0xff]  }
 0x1b2   :  { %1825 = vmatprep.subr.bf16.mxu1 %v3019_v18  ;;  %1948 = vmatprep.subr.bf16.mxu0 %v3022_v19  ;;  %v3085_v17 = vld [vmem:[#allocation8 + $0x18] sm:$0xff]   ;;  %v3087_v19 = vld [vmem:[#allocation8 + $0x60] sm:$0xff]  }
 0x1b3   :  { %v3086_v18 = vld [vmem:[#allocation8 + $0x98] sm:$0xff]  }
 0x1b5   :  { %1826 = vmatpush1.bf16.msra.mxu1 %v3017_v20  ;;  %1949 = vmatpush1.bf16.msra.mxu0 %v3020_v5  ;;  %v3088_v20 = vld [vmem:[#allocation8 + $0xe0] sm:$0xff]  }
 0x1b6   :  { %1827 = vmatprep.subr.bf16.mxu1 %v3025_v22  ;;  %1950 = vmatprep.subr.bf16.mxu0 %v3028_v23  ;;  %v3089_v5 = vld [vmem:[#allocation8 + $0x20] sm:$0xff]   ;;  %v3091_v22 = vld [vmem:[#allocation8 + $0x68] sm:$0xff]  }
 0x1b7   :  { %v3092_v23 = vld [vmem:[#allocation8 + $0xe8] sm:$0xff]  }
 0x1b9   :  { %1828 = vmatpush1.bf16.msra.mxu1 %v3023_v24  ;;  %1951 = vmatpush1.bf16.msra.mxu0 %v3026_v25  ;;  %v3093_v24 = vld [vmem:[#allocation8 + $0x28] sm:$0xff]  }
 0x1ba   :  { %1829 = vmatprep.subr.bf16.mxu1 %v3031_v27  ;;  %1952 = vmatprep.subr.bf16.mxu0 %v3034_v28  ;;  %v3094_v25 = vld [vmem:[#allocation8 + $0xa8] sm:$0xff]   ;;  %v3096_v27 = vld [vmem:[#allocation8 + $0xf0] sm:$0xff]  }
 0x1bb   :  { %v3097_v28 = vld [vmem:[#allocation8 + $0x30] sm:$0xff]  }
 0x1bd   :  { %1830 = vmatpush1.bf16.msra.mxu1 %v3029_v29  ;;  %1953 = vmatpush1.bf16.msra.mxu0 %v3032_v30  ;;  %v3098_v29 = vld [vmem:[#allocation8 + $0xb0] sm:$0xff]   ;;  %v3099_v30 = vld [vmem:[#allocation8 + $0x78] sm:$0xff]  }
 0x1be   :  { %1831 = vmatprep.subr.bf16.mxu1 %v3037_v32  ;;  %1954 = vmatprep.subr.bf16.mxu0 %v3040_v33  ;;  %v3101_v32 = vld [vmem:[#allocation8 + $0x38] sm:$0xff]  }
 0x1bf   :  { %v3102_v33 = vld [vmem:[#allocation8 + $0xb8] sm:$0xff]  }
 0x1c1   :  { %1832 = vmatpush1.bf16.msra.mxu1 %v3035_v36  ;;  %1955 = vmatpush1.bf16.msra.mxu0 %v3038_v37  ;;  %v752_v36 = vrot.slane %v747_v34, %v134_v54  ;;  %v760_v37 = vrot.slane %v747_v34, %v142_v59 }
 0x1c2   :  { %1833 = vmatprep.subr.bf16.mxu1 %v3043_v55  ;;  %1956 = vmatprep.subr.bf16.mxu0 %v3046_v38  ;;  %v756_v55 = vrot.slane %v747_v34, %v138_v56  ;;  %v764_v38 = vrot.slane %v747_v34, %v146_v3 }
 0x1c5   :  { %1834 = vmatpush1.bf16.msra.mxu1 %v3041_v39  ;;  %1957 = vmatpush1.bf16.msra.mxu0 %v3044_v40 }
 0x1c6   :  { %1835 = vmatprep.subr.bf16.mxu1 %v3049_v35  ;;  %1958 = vmatprep.subr.bf16.mxu0 %v3052_v41 }
 0x1c9   :  { %1836 = vmatpush1.bf16.msra.mxu1 %v3047_v42  ;;  %1959 = vmatpush1.bf16.msra.mxu0 %v3050_v43 }
 0x1ca   :  { %1837 = vmatprep.subr.bf16.mxu1 %v3055_v44  ;;  %1960 = vmatprep.subr.bf16.mxu0 %v3058_v45 }
 0x1cd   :  { %1838 = vmatpush1.bf16.msra.mxu1 %v3053_v46  ;;  %1961 = vmatpush1.bf16.msra.mxu0 %v3056_v47 }
 0x1ce   :  { %1839 = vmatprep.subr.bf16.mxu1 %v3061_v48  ;;  %1962 = vmatprep.subr.bf16.mxu0 %v3064_v49 }
 0x1d1   :  { %1840 = vmatpush1.bf16.msra.mxu1 %v3059_v51  ;;  %1963 = vmatpush1.bf16.msra.mxu0 %v3062_v52 }
 0x1d2   :  { %1841 = vmatprep.subr.bf16.mxu1 %v3067_v58  ;;  %1964 = vmatprep.subr.bf16.mxu0 %v3070_v60 }
 0x1d5   :  { %1842 = vmatpush1.bf16.msra.mxu1 %v3065_v61  ;;  %1965 = vmatpush1.bf16.msra.mxu0 %v3068_v62 }
 0x1d6   :  { %2635 = vmatprep.subr.bf16.mxu1 %v3071_v0  ;;  %2657 = vmatprep.subr.bf16.mxu0 %v3072_v1 }
 0x1d8   :  { %1844 = vmatmul.mubr.bf16.vlgmr.msra.gmra.mrb[4].mxu1 %v553_v6  ;;  %1967 = vmatmul.mubr.bf16.vlgmr.msra.gmra.mrb[8].mxu0 %v553_v6 }
 0x1d9   :  { %2636 = vmatpush3.bf16.msra.mxu1 %v3073_v2  ;;  %2658 = vmatpush3.bf16.msra.mxu0 %v3074_v4 }
 0x1da   :  { %2637 = vmatprep.subr.bf16.mxu1 %v3075_v7  ;;  %2659 = vmatprep.subr.bf16.mxu0 %v3076_v8 }
 0x1dd   :  { %2638 = vmatpush3.bf16.msra.mxu1 %v3077_v9  ;;  %2660 = vmatpush3.bf16.msra.mxu0 %v3078_v10  ;;  %v2602_v10 = vld [vmem:[%s3418_s6] ss:$0 sm:$0xff]  ;;  %s3215_s6 = scalar_lea.vmem %s2352_s9, 128 }
 0x1de   :  { %2639 = vmatprep.subr.bf16.mxu1 %v3079_v11  ;;  %2661 = vmatprep.subr.bf16.mxu0 %v3080_v12  ;;  %p3216_p4 = scmp.ne.s32.totalorder %s2352_s9, %s3215_s6  ;;  %p3221_p6 = scmp.lt.s32.totalorder %s3215_s6, %s3215_s6 }
 0x1e0   :  { %p3222_p7 = por %p3221_p6, %p3220_p5 }
 0x1e1   :  { %2640 = vmatpush3.bf16.msra.mxu1 %v3081_v13  ;;  %2662 = vmatpush3.bf16.msra.mxu0 %v3082_v14 }
 0x1e2   :  { %2641 = vmatprep.subr.bf16.mxu1 %v3083_v15  ;;  %2663 = vmatprep.subr.bf16.mxu0 %v3084_v16  ;;  %p3223_p8 = pnand %p3222_p7, %p3216_p4 }
 0x1e5   :  { %2642 = vmatpush3.bf16.msra.mxu1 %v3085_v17  ;;  %2664 = vmatpush3.bf16.msra.mxu0 %v3086_v18 }
 0x1e6   :  { %2643 = vmatprep.subr.bf16.mxu1 %v3087_v19  ;;  %2665 = vmatprep.subr.bf16.mxu0 %v3088_v20 }
 0x1e9   :  { %2644 = vmatpush3.bf16.msra.mxu1 %v3089_v5  ;;  %2666 = vmatpush3.bf16.msra.mxu0 %v3090_v21 }
 0x1ea   :  { %2645 = vmatprep.subr.bf16.mxu1 %v3091_v22  ;;  %2667 = vmatprep.subr.bf16.mxu0 %v3092_v23 }
 0x1ed   :  { %2646 = vmatpush3.bf16.msra.mxu1 %v3093_v24  ;;  %2668 = vmatpush3.bf16.msra.mxu0 %v3094_v25 }
 0x1ee   :  { %2647 = vmatprep.subr.bf16.mxu1 %v3095_v26  ;;  %2669 = vmatprep.subr.bf16.mxu0 %v3096_v27 }
 0x1f1   :  { %2648 = vmatpush3.bf16.msra.mxu1 %v3097_v28  ;;  %2670 = vmatpush3.bf16.msra.mxu0 %v3098_v29 }
 0x1f2   :  { %2649 = vmatprep.subr.bf16.mxu1 %v3099_v30  ;;  %2671 = vmatprep.subr.bf16.mxu0 %v3100_v31 }
 0x1f5   :  { %2650 = vmatpush3.bf16.msra.mxu1 %v3101_v32  ;;  %2672 = vmatpush3.bf16.msra.mxu0 %v3102_v33 }
 0x2ab   :  { %v1845_v39 = vpop.f32.mrb[4].mxu1  ;;  %v1968_v40 = vpop.f32.mrb[8].mxu0 }
 0x2ac   :  { %v2679_v35 = vadd.f32 %v1845_v39, %v752_v36  ;;  %v2681_v41 = vadd.f32 %v1968_v40, %v760_v37  ;;  %v1847_v42 = vpop.f32.mrb[5].mxu1  ;;  %v1970_v43 = vpop.f32.mrb[9].mxu0 }
 0x2ad   :  { %v2680_v44 = vadd.f32 %v1847_v42, %v756_v55  ;;  %v2682_v45 = vadd.f32 %v1970_v43, %v764_v38  ;;  %v1849_v46 = vpop.f32.mrb[6].mxu1  ;;  %v1972_v47 = vpop.f32.mrb[10].mxu0 }
 0x2ae   :  { %v1975_v54 = vmul.f32 0.5, %v2679_v35  ;;  %v1977_v48 = vmul.f32 0.5, %v2681_v41  ;;  %v1850_v49 = vpop.f32.mrb[7].mxu1  ;;  %v1973_v59 = vpop.f32.mrb[11].mxu0 }
 0x2af   :  { %v1976_v50 = vmul.f32 0.5, %v2680_v44  ;;  %v1978_v51 = vmul.f32 0.5, %v2682_v45 }
 0x2b0   :  { %3115 = vtanh.f32 %v1975_v54 }
 0x2b1   :  { %3117 = vtanh.f32 %v1977_v48 }
 0x2b2   :  { %3119 = vtanh.f32 %v1976_v50 }
 0x2b3   :  { %3121 = vtanh.f32 %v1978_v51 }
 0x2ba   :  { %v3116_v53 = vpop.eup %3115 }
 0x2bb   :  { %v3118_v56 = vpop.eup %3117  ;;  %v1983_v3 = vmul.f32 0.5, %v3116_v53 }
 0x2bc   :  { %v3120_v52 = vpop.eup %3119  ;;  %v1985_v57 = vmul.f32 0.5, %v3118_v56 }
 0x2bd   :  { %v3122_v58 = vpop.eup %3121  ;;  %v1984_v60 = vmul.f32 0.5, %v3120_v52  ;;  %v1987_v61 = vadd.f32 0.5, %v1983_v3 }
 0x2be   :  { %v1986_v62 = vmul.f32 0.5, %v3122_v58  ;;  %v1989_v63 = vadd.f32 0.5, %v1985_v57 }
 0x2bf   :  { %v1988_v0 = vadd.f32 0.5, %v1984_v60  ;;  %v1991_v4 = vpack.c.bf16 %v1987_v61, %v1987_v61 }
 0x2c0   :  { %v1990_v1 = vadd.f32 0.5, %v1986_v62  ;;  %v1993_v7 = vpack.c.bf16 %v1989_v63, %v1989_v63 }
 0x2c1   :  { %v1992_v2 = vpack.c.bf16 %v1988_v0, %v1988_v0 }
 0x2c2   :  { %v1994_v6 = vpack.c.bf16 %v1990_v1, %v1990_v1 }
 0x2c3   :  { %2290 = vmatprep.mubr.bf16.mxu1 %v1992_v2 }
 0x2c4   :  { %2330 = vmatprep.mubr.bf16.mxu0 %v1994_v6  ;;  %2291 = vmatmul.mubr.bf16.vlgmr.msra.gmra.mrb[8].mxu1 %v1991_v4 }
 0x2c5   :  { %2331 = vmatmul.mubr.bf16.vlgmr.msra.gmra.mrb[12].mxu0 %v1993_v7 }
 0x397   :  { %v2651_v8 = vpop.f32.mrb[8].mxu1 }
 0x398   :  { %v2673_v9 = vpop.f32.mrb[12].mxu0  ;;  %v2652_v11 = vpop.f32.mrb[9].mxu1 }
 0x399   :  { %v2653_v12 = vadd.f32 %v2652_v11, %v2651_v8  ;;  %v2674_v13 = vpop.f32.mrb[13].mxu0  ;;  %v2654_v14 = vpop.f32.mrb[10].mxu1 }
 0x39a   :  { %v2675_v15 = vadd.f32 %v2674_v13, %v2673_v9  ;;  %v2676_v16 = vpop.f32.mrb[14].mxu0  ;;  %v2655_v17 = vpop.f32.mrb[11].mxu1 }
 0x39b   :  { %v2293_v18 = vadd.f32 %v2653_v12, %v2602_v10  ;;  %v2677_v19 = vpop.f32.mrb[15].mxu0 }
 0x39d   :  { %v2333_v20 = vadd.f32 %v2675_v15, %v2293_v18 }
 0x39f   :  { %v2338_v5 = vmul.f32 1.442695, %v2333_v20 }
 0x3a1   :  { %3123 = vpow2.f32 %v2338_v5 }
 0x3ab   :  { %v3124_v21 = vpop.eup %3123 }
 0x3ac   :  { %2340 = vadd.xlane.f32.xlu0 %v3124_v21 }
 0x439   :  { %v2341_v22 = vpop.xlane.xlu0 %2340 }
 0x43a   :  { %3125 = vrcp.f32 %v2341_v22 }
 0x444   :  { %v3126_v23 = vpop.eup %3125 }
 0x445   :  { %v2343_v24 = vmul.f32 %v3126_v23, %v3124_v21 }
 0x447   :  { %2344 = vst [vmem:[#allocation10] sm:$0xff] %v2343_v24 }
 0x448   :  { %3226 = shalt.err (!%p3223_p8)
}
 0x449   :  { %s3227_s12 = scalar_lea.hbm %s3419_s7, 128 }
 0x44a   :  { %p3228_p9 = scmp.ne.s32.totalorder %s3419_s7, %s3227_s12  ;;  %p3231_p10 = scmp.lt.u32.totalorder %s3227_s12, %s3419_s7 }
 0x44c   :  { %p3233_p11 = pnand %p3231_p10, %p3228_p9 }
 0x44e   :  { %3236 = shalt.err (!%p3233_p11)
}
 0x44f   :  { %2354 = dma.vmem_to_hbm [thread:$0]  %s2352_s9, 128, %s3419_s7, [#allocation4]  }
 0x450   :  { %3243 = dma.done.wait [#allocation4], 128  }
 0x451   :  { %3244 = vsyncadd [#allocation4], 4294967168 }
 0x452   :  { %2358 = vsyncpa [#allocation3], 1 }
 0x453   :  { %2359 = vsyncpa [#allocation6], 1 }
 0x454   :  { %2360 = vsyncpa [#allocation9], 1 }
 0x455   :  { %2361 = vsyncpa [#allocation4], 1 }

</bundles_post_ra>
